<compile_context>
chip_gen: v7x
topology: tpu7x:2x2x1
jax: 0.10.0
libtpu: 0.0.40
codegen_flags: <defaults>
</compile_context>

<pallas_src>
import numpy as np
import jax
import jax.numpy as jnp
from jax.experimental import pallas as pl
from jax.experimental.pallas import tpu as pltpu

POOL_SIZES = (6, 3, 2, 1)
BN_EPS = 1e-5


def _round_up(x, m):
    return ((x + m - 1) // m) * m


# ---------------------------------------------------------------------------
# Precomputed linear operators (host-side numpy)
# ---------------------------------------------------------------------------
def _adaptive_pool_matrix(in_size, out_size):
    """PyTorch AdaptiveAvgPool1d as a (out_size, in_size) averaging matrix."""
    P = np.zeros((out_size, in_size), np.float32)
    for o in range(out_size):
        s = (o * in_size) // out_size
        e = -((-(o + 1) * in_size) // out_size)  # ceil((o+1)*I/O)
        P[o, s:e] = 1.0 / (e - s)
    return P


def _bilinear_matrix(in_size, out_size):
    """Bilinear (align_corners=True) 1-D upsample as a (out_size, in_size) matrix."""
    U = np.zeros((out_size, in_size), np.float32)
    for i in range(out_size):
        s = 0.0 if (in_size == 1 or out_size == 1) else i * (in_size - 1) / (out_size - 1)
        i0 = int(np.floor(s))
        i1 = min(i0 + 1, in_size - 1)
        w = s - i0
        U[i, i0] += 1.0 - w
        U[i, i1] += w
    return U


def _build_pool_upsample(H, W, pool_sizes, HW_pad):
    """P (S_pad, HW_pad) pooling operator and U (HW_pad, S_pad) upsample operator.

    Per-level rows/cols are padded to multiples of 8 (sublane-aligned branch slices) and
    the total S is padded to 128 so U is lane-dense and U@z has an aligned K."""
    HW = H * W
    sizes = [ps * ps for ps in pool_sizes]
    sizes_pad = [_round_up(s, 8) for s in sizes]
    offsets = [int(o) for o in np.cumsum([0] + sizes_pad[:-1])]
    S_pad = _round_up(int(sum(sizes_pad)), 128)
    P = np.zeros((S_pad, HW_pad), np.float32)
    U = np.zeros((HW_pad, S_pad), np.float32)
    for ps, s, off in zip(pool_sizes, sizes, offsets):
        Pb = np.kron(_adaptive_pool_matrix(H, ps), _adaptive_pool_matrix(W, ps))  # (s, HW)
        Ub = np.kron(_bilinear_matrix(ps, H), _bilinear_matrix(ps, W))            # (HW, s)
        P[off:off + s, :HW] = Pb
        U[:HW, off:off + s] = Ub
    return P, U, sizes, sizes_pad, offsets, S_pad


# ---------------------------------------------------------------------------
# Fused Pallas kernel (one grid step per batch element)
# ---------------------------------------------------------------------------
def _make_ppm_fused_kernel(nb, offsets, sizes_pad):
    def kernel(x_ref, p_ref, u_ref, wcbr_ref, bcbr_ref, wchi_ref, wclo_ref, bc_ref,
               o_ref, z_scr):
        x = x_ref[0]                                               # (HW_pad, C_pad) bf16

        # ---- adaptive avg-pool of all 4 pyramid levels at once: pooled = P @ x.
        #      P stays f32 so the averaging reciprocals are exact (tiny matmul).
        pooled = jnp.dot(p_ref[...], x.astype(jnp.float32),
                         preferred_element_type=jnp.float32)      # (S_pad, C_pad)

        # ---- shared 1x1 cbr conv (+ folded BN) + ReLU for every pyramid level
        y = jnp.dot(pooled.astype(jnp.bfloat16), wcbr_ref[...],
                    preferred_element_type=jnp.float32) + bcbr_ref[...]
        y = jnp.maximum(y, 0.0).astype(jnp.bfloat16)               # (S_pad, cp_pad)

        # ---- per-branch block of the final 1x1 conv (reassociated upsample path):
        #      upsampled contribution = U @ (relu(cbr) @ W_hi), not (U @ relu(cbr)) @ W_hi
        z_scr[...] = jnp.zeros_like(z_scr)                         # padded rows must be 0
        for i in range(nb):                                        # static unroll, aligned
            off, s = offsets[i], sizes_pad[i]
            zi = jnp.dot(y[off:off + s, :], wchi_ref[i],
                         preferred_element_type=jnp.float32)       # (s, Cout_pad)
            z_scr[off:off + s, :] = zi.astype(z_scr.dtype)

        # ---- main path (the hot matmuls): out = relu(x @ W_lo + U @ z + bc), bf16 out
        acc = jnp.dot(x, wclo_ref[...], preferred_element_type=jnp.float32)
        acc = acc + jnp.dot(u_ref[...], z_scr[...], preferred_element_type=jnp.float32)
        acc = acc + bc_ref[...]
        o_ref[0] = jnp.maximum(acc, 0.0).astype(o_ref.dtype)

    return kernel


# ---------------------------------------------------------------------------
# Public forward
# ---------------------------------------------------------------------------
def ppm_forward_nhwc(x_nhwc, params):
    """Channel-last forward: (N, H, W, C) -> (N, H, W, Cout) in bfloat16."""
    g = params["geom"]
    N, H, W, C = x_nhwc.shape
    HW = H * W
    assert C == g["C"] and HW == g["HW"], "params were built for a different input shape"
    C_pad, HW_pad = g["C_pad"], g["HW_pad"]
    S_pad, Cout, Cout_pad = g["S_pad"], g["Cout"], g["Cout_pad"]
    cp_pad, nb = g["cp_pad"], g["nb"]

    # flatten spatial, zero-pad to TPU-friendly shapes, cast to bf16 (single fused XLA pass)
    x_pad = jnp.pad(x_nhwc.reshape(N, HW, C),
                    ((0, 0), (0, HW_pad - HW), (0, C_pad - C))).astype(jnp.bfloat16)

    flops = 2 * N * (S_pad * HW_pad * C_pad            # P @ x
                     + S_pad * C_pad * cp_pad          # pooled @ W_cbr
                     + S_pad * cp_pad * Cout_pad       # per-branch z
                     + HW_pad * C_pad * Cout_pad       # x @ W_lo
                     + HW_pad * S_pad * Cout_pad)      # U @ z
    bytes_accessed = (N * HW_pad * C_pad * 2           # x (bf16, read exactly once)
                      + N * HW_pad * Cout_pad * 2      # out (bf16)
                      + S_pad * HW_pad * 4             # P (f32)
                      + HW_pad * S_pad * 2             # U (bf16)
                      + C_pad * cp_pad * 2 + cp_pad * 4
                      + nb * cp_pad * Cout_pad * 2
                      + C_pad * Cout_pad * 2 + Cout_pad * 4)

    # Per-step VMEM working set: x/out double-buffered, constants single-buffered,
    # plus f32 intermediates. Raise the scoped limit only when actually needed.
    vmem_est = (2 * HW_pad * C_pad * 2
                + 2 * HW_pad * Cout_pad * 2
                + S_pad * HW_pad * 4
                + HW_pad * S_pad * 2
                + C_pad * cp_pad * 2 + cp_pad * 4
                + nb * cp_pad * Cout_pad * 2
                + C_pad * Cout_pad * 2 + Cout_pad * 4
                + S_pad * Cout_pad * 2                 # z scratch
                + S_pad * C_pad * 4                    # pooled intermediate
                + HW_pad * Cout_pad * 4)               # f32 accumulator
    vmem_limit = int(min(max(vmem_est + (4 << 20), 32 << 20), 100 << 20))

    def _const(shape):
        # constant-index operand: resident across the whole grid -> single buffer
        return pl.BlockSpec(shape, lambda n: (0,) * len(shape),
                            pipeline_mode=pl.Buffered(1))

    out = pl.pallas_call(
        _make_ppm_fused_kernel(nb, g["offsets"], g["sizes_pad"]),
        out_shape=jax.ShapeDtypeStruct((N, HW_pad, Cout_pad), jnp.bfloat16),
        grid=(N,),
        in_specs=[
            pl.BlockSpec((1, HW_pad, C_pad), lambda n: (n, 0, 0)),   # x (streamed once)
            _const((S_pad, HW_pad)),                                 # P   (f32)
            _const((HW_pad, S_pad)),                                 # U   (bf16)
            _const((C_pad, cp_pad)),                                 # W_cbr
            _const((1, cp_pad)),                                     # b_cbr
            _const((nb, cp_pad, Cout_pad)),                          # W_hi per branch
            _const((C_pad, Cout_pad)),                               # W_lo
            _const((1, Cout_pad)),                                   # b_c
        ],
        out_specs=pl.BlockSpec((1, HW_pad, Cout_pad), lambda n: (n, 0, 0)),
        scratch_shapes=[pltpu.VMEM((S_pad, Cout_pad), jnp.bfloat16)],
        compiler_params=pltpu.CompilerParams(
            dimension_semantics=("parallel",),
            vmem_limit_bytes=vmem_limit),
        cost_estimate=pl.CostEstimate(flops=int(flops), transcendentals=0,
                                      bytes_accessed=int(bytes_accessed)),
    )(x_pad, params["P"], params["U"], params["wcbr"], params["bcbr"],
      params["wchi"], params["wclo"], params["bc"])

    return out[:, :HW, :Cout].reshape(N, H, W, Cout)                 # stays bf16


def ppm_forward(x_nchw, params):
    """PyTorch-interface wrapper: NCHW in, NCHW out (bfloat16)."""
    # TODO(synk): in a real NHWC pipeline skip these transposes entirely (ppm_forward_nhwc).
    x_nhwc = jnp.transpose(x_nchw, (0, 2, 3, 1))
    out = ppm_forward_nhwc(x_nhwc, params)
    return jnp.transpose(out, (0, 3, 1, 2))                          # bf16 end-to-end


# ---------------------------------------------------------------------------
# Deterministic parameter init (Conv2dReLU = 1x1 conv, no bias + BN(eval) + ReLU)
# ---------------------------------------------------------------------------
def init_params(key, C, H, W, out_channels=256):
    nb = len(POOL_SIZES)
    assert C % nb == 0, "in_channels must be divisible by len(pool_sizes)"
    cp = C // nb
    HW = H * W

    # static geometry / padding (all kernel blocks lane/sublane friendly)
    C_pad = _round_up(C, 128)
    cp_pad = _round_up(cp, 128)
    Cout = out_channels
    Cout_pad = _round_up(Cout, 128)
    HW_pad = _round_up(HW, 8)

    keys = jax.random.split(key, 10)

    # cbr: Conv2d(C -> cp, k=1, bias=False) + BatchNorm2d(cp)
    wcbr = jax.random.normal(keys[0], (cp, C), jnp.float32) * 0.1
    g1 = jax.random.uniform(keys[1], (cp,), jnp.float32, 0.5, 1.5)
    b1 = jax.random.normal(keys[2], (cp,), jnp.float32) * 0.1
    rm1 = jax.random.normal(keys[3], (cp,), jnp.float32) * 0.1
    rv1 = jax.random.uniform(keys[4], (cp,), jnp.float32, 0.5, 1.5)

    # final: Conv2d(2C -> out_channels, k=1, bias=False) + BatchNorm2d(out_channels)
    wc = jax.random.normal(keys[5], (Cout, 2 * C), jnp.float32) * 0.1
    g2 = jax.random.uniform(keys[6], (Cout,), jnp.float32, 0.5, 1.5)
    b2 = jax.random.normal(keys[7], (Cout,), jnp.float32) * 0.1
    rm2 = jax.random.normal(keys[8], (Cout,), jnp.float32) * 0.1
    rv2 = jax.random.uniform(keys[9], (Cout,), jnp.float32, 0.5, 1.5)

    # fold eval-mode BatchNorm into the 1x1 conv weights
    s1 = g1 / jnp.sqrt(rv1 + BN_EPS)
    wcbr_eff = wcbr.T * s1[None, :]          # (C, cp)
    bcbr_eff = b1 - rm1 * s1                 # (cp,)
    s2 = g2 / jnp.sqrt(rv2 + BN_EPS)
    wc_eff = wc.T * s2[None, :]              # (2C, Cout)
    bc_eff = b2 - rm2 * s2                   # (Cout,)

    P, U, sizes, sizes_pad, offsets, S_pad = _build_pool_upsample(H, W, POOL_SIZES, HW_pad)

    # zero-padded kernel operands (weights bf16, pooling operator + biases f32)
    wcbr_p = jnp.zeros((C_pad, cp_pad), jnp.float32).at[:C, :cp].set(wcbr_eff)
    bcbr_p = jnp.zeros((1, cp_pad), jnp.float32).at[0, :cp].set(bcbr_eff)
    wclo_p = jnp.zeros((C_pad, Cout_pad), jnp.float32).at[:C, :Cout].set(wc_eff[:C])
    wchi_p = jnp.zeros((nb, cp_pad, Cout_pad), jnp.float32)
    for i in range(nb):
        wchi_p = wchi_p.at[i, :cp, :Cout].set(wc_eff[C + i * cp:C + (i + 1) * cp])
    bc_p = jnp.zeros((1, Cout_pad), jnp.float32).at[0, :Cout].set(bc_eff)

    geom = dict(nb=nb, C=C, C_pad=C_pad, cp=cp, cp_pad=cp_pad, HW=HW, HW_pad=HW_pad,
                S_pad=S_pad, offsets=offsets, sizes_pad=sizes_pad,
                Cout=Cout, Cout_pad=Cout_pad)

    return dict(
        P=jnp.asarray(P, jnp.float32),       # f32: exact pooling reciprocals (tiny matmul)
        U=jnp.asarray(U, jnp.bfloat16),
        wcbr=wcbr_p.astype(jnp.bfloat16),
        bcbr=bcbr_p,                         # biases stay f32
        wchi=wchi_p.astype(jnp.bfloat16),
        wclo=wclo_p.astype(jnp.bfloat16),
        bc=bc_p,
        geom=geom,
        # unpadded folded params for the numpy reference
        wcbr_eff=wcbr_eff, bcbr_eff=bcbr_eff, wc_eff=wc_eff, bc_eff=bc_eff,
    )


# ---------------------------------------------------------------------------
# Pure-numpy reference (mirrors the PyTorch forward, NCHW)
# ---------------------------------------------------------------------------
def _adaptive_avg_pool_np(x, o):
    N, C, H, W = x.shape
    out = np.zeros((N, C, o, o), np.float32)
    for a in range(o):
        hs, he = (a * H) // o, -((-(a + 1) * H) // o)
        for b in range(o):
            ws, we = (b * W) // o, -((-(b + 1) * W) // o)
            out[:, :, a, b] = x[:, :, hs:he, ws:we].mean(axis=(2, 3))
    return out


def _bilinear_up_np(x, H, W):
    N, C, h, w = x.shape
    out = np.zeros((N, C, H, W), np.float32)
    for i in range(H):
        s = 0.0 if (h == 1 or H == 1) else i * (h - 1) / (H - 1)
        i0 = int(np.floor(s)); i1 = min(i0 + 1, h - 1); wi = s - i0
        for j in range(W):
            t = 0.0 if (w == 1 or W == 1) else j * (w - 1) / (W - 1)
            j0 = int(np.floor(t)); j1 = min(j0 + 1, w - 1); wj = t - j0
            out[:, :, i, j] = ((1 - wi) * (1 - wj) * x[:, :, i0, j0]
                               + (1 - wi) * wj * x[:, :, i0, j1]
                               + wi * (1 - wj) * x[:, :, i1, j0]
                               + wi * wj * x[:, :, i1, j1])
    return out


def ppm_reference(x_nchw, params):
    x = np.asarray(x_nchw, np.float32)
    wcbr = np.asarray(params["wcbr_eff"]); bcbr = np.asarray(params["bcbr_eff"])
    wc = np.asarray(params["wc_eff"]); bc = np.asarray(params["bc_eff"])
    H, W = x.shape[-2:]
    outs = [x]
    for ps in POOL_SIZES:
        p = _adaptive_avg_pool_np(x, ps)
        y = np.einsum("nchw,co->nohw", p, wcbr) + bcbr[None, :, None, None]
        y = np.maximum(y, 0.0)
        outs.append(_bilinear_up_np(y, H, W))
    cat = np.concatenate(outs, axis=1)                     # (N, 2C, H, W)
    o = np.einsum("nchw,co->nohw", cat, wc) + bc[None, :, None, None]
    return np.maximum(o, 0.0)                              # dropout = identity (eval)


if __name__ == "__main__":
    N, C, H, W = 2, 8, 16, 16          # in_channels divisible by len(pool_sizes)
    OUT_CHANNELS = 256                 # PPM default

    key = jax.random.PRNGKey(0)
    kx, kp = jax.random.split(key)
    x = jax.random.normal(kx, (N, C, H, W), jnp.float32)
    params = init_params(kp, C, H, W, OUT_CHANNELS)

    fwd = jax.jit(lambda inp: ppm_forward(inp, params))    # fuses the layout plumbing
    out = jax.block_until_ready(fwd(x))
    assert out.shape == (N, OUT_CHANNELS, H, W)

    ref = ppm_reference(np.asarray(x), params)
    np.testing.assert_allclose(np.asarray(out.astype(jnp.float32)), ref,
                               rtol=3e-2, atol=3e-2)

    print("KERNEL_OK")
</pallas_src>

<mosaic_0001>
module attributes {stable_mosaic.version = 11 : i64} {
  func.func @kernel(%arg0: i32, %arg1: memref<1x256x128xbf16, #tpu.memory_space<vmem>>, %arg2: memref<128x256xf32, #tpu.memory_space<vmem>>, %arg3: memref<256x128xbf16, #tpu.memory_space<vmem>>, %arg4: memref<128x128xbf16, #tpu.memory_space<vmem>>, %arg5: memref<1x128xf32, #tpu.memory_space<vmem>>, %arg6: memref<4x128x256xbf16, #tpu.memory_space<vmem>>, %arg7: memref<128x256xbf16, #tpu.memory_space<vmem>>, %arg8: memref<1x256xf32, #tpu.memory_space<vmem>>, %arg9: memref<1x256x256xbf16, #tpu.memory_space<vmem>>, %arg10: memref<128x256xbf16, #tpu.memory_space<vmem>>) attributes {dimension_semantics = [#tpu.dimension_semantics<parallel>], iteration_bounds = array<i64: 2>, scalar_prefetch = 0 : i64, scratch_operands = 1 : i64, tpu.core_type = #tpu.core_type<tc>, window_params = [{transform_indices = @transform_0, window_bounds = array<i64: 1, 256, 128>}, {pipeline_mode = #tpu.pipeline_mode<synchronous>, transform_indices = @transform_1, window_bounds = array<i64: 128, 256>}, {pipeline_mode = #tpu.pipeline_mode<synchronous>, transform_indices = @transform_2, window_bounds = array<i64: 256, 128>}, {pipeline_mode = #tpu.pipeline_mode<synchronous>, transform_indices = @transform_3, window_bounds = array<i64: 128, 128>}, {pipeline_mode = #tpu.pipeline_mode<synchronous>, transform_indices = @transform_4, window_bounds = array<i64: 1, 128>}, {pipeline_mode = #tpu.pipeline_mode<synchronous>, transform_indices = @transform_5, window_bounds = array<i64: 4, 128, 256>}, {pipeline_mode = #tpu.pipeline_mode<synchronous>, transform_indices = @transform_6, window_bounds = array<i64: 128, 256>}, {pipeline_mode = #tpu.pipeline_mode<synchronous>, transform_indices = @transform_7, window_bounds = array<i64: 1, 256>}, {transform_indices = @transform_8, window_bounds = array<i64: 1, 256, 256>}]} {
    %c0 = arith.constant 0 : index
    %c0_0 = arith.constant 0 : index
    %c0_1 = arith.constant 0 : index
    %0 = vector.load %arg1[%c0, %c0_0, %c0_1] : memref<1x256x128xbf16, #tpu.memory_space<vmem>>, vector<1x256x128xbf16>
    %1 = vector.shape_cast %0 : vector<1x256x128xbf16> to vector<256x128xbf16>
    %c0_2 = arith.constant 0 : index
    %c0_3 = arith.constant 0 : index
    %2 = vector.load %arg2[%c0_2, %c0_3] : memref<128x256xf32, #tpu.memory_space<vmem>>, vector<128x256xf32>
    %3 = arith.extf %1 : vector<256x128xbf16> to vector<256x128xf32>
    %cst = arith.constant dense<0.000000e+00> : vector<128x128xf32>
    %4 = tpu.matmul %2, %3, %cst {dimension_numbers = #tpu.dot_dimension_numbers<[1], [0], [0], [1], [0, 0, 1, 1], [], []>} : vector<128x256xf32>, vector<256x128xf32>, vector<128x128xf32> -> vector<128x128xf32>
    %5 = arith.truncf %4 : vector<128x128xf32> to vector<128x128xbf16>
    %c0_4 = arith.constant 0 : index
    %c0_5 = arith.constant 0 : index
    %6 = vector.load %arg4[%c0_4, %c0_5] : memref<128x128xbf16, #tpu.memory_space<vmem>>, vector<128x128xbf16>
    %cst_6 = arith.constant dense<0.000000e+00> : vector<128x128xf32>
    %7 = tpu.matmul %5, %6, %cst_6 {dimension_numbers = #tpu.dot_dimension_numbers<[1], [0], [0], [1], [0, 0, 1, 1], [], []>} : vector<128x128xbf16>, vector<128x128xbf16>, vector<128x128xf32> -> vector<128x128xf32>
    %c0_7 = arith.constant 0 : index
    %c0_8 = arith.constant 0 : index
    %8 = vector.load %arg5[%c0_7, %c0_8] : memref<1x128xf32, #tpu.memory_space<vmem>>, vector<1x128xf32>
    %9 = vector.broadcast %8 : vector<1x128xf32> to vector<128x128xf32>
    %10 = arith.addf %7, %9 : vector<128x128xf32>
    %cst_9 = arith.constant 0.000000e+00 : f32
    %11 = vector.broadcast %cst_9 : f32 to vector<128x128xf32>
    %12 = arith.maximumf %10, %11 : vector<128x128xf32>
    %13 = arith.truncf %12 : vector<128x128xf32> to vector<128x128xbf16>
    %cst_10 = arith.constant 0.000000e+00 : bf16
    %14 = vector.broadcast %cst_10 : bf16 to vector<128x256xbf16>
    %c0_11 = arith.constant 0 : index
    %c0_12 = arith.constant 0 : index
    %15 = vector.load %arg10[%c0_11, %c0_12] : memref<128x256xbf16, #tpu.memory_space<vmem>>, vector<128x256xbf16>
    tpu.vector_store %arg10[%c0_11, %c0_12], %14 {strides = array<i32>} : memref<128x256xbf16, #tpu.memory_space<vmem>>, vector<128x256xbf16>,
    %16 = vector.extract_strided_slice %13 {offsets = [0, 0], sizes = [40, 128], strides = [1, 1]} : vector<128x128xbf16> to vector<40x128xbf16>
    %c0_13 = arith.constant 0 : index
    %c0_14 = arith.constant 0 : index
    %c0_15 = arith.constant 0 : index
    %17 = vector.load %arg6[%c0_13, %c0_14, %c0_15] : memref<4x128x256xbf16, #tpu.memory_space<vmem>>, vector<1x128x256xbf16>
    %18 = vector.shape_cast %17 : vector<1x128x256xbf16> to vector<128x256xbf16>
    %cst_16 = arith.constant dense<0.000000e+00> : vector<40x256xf32>
    %19 = tpu.matmul %16, %18, %cst_16 {dimension_numbers = #tpu.dot_dimension_numbers<[1], [0], [0], [1], [0, 0, 1, 1], [], []>} : vector<40x128xbf16>, vector<128x256xbf16>, vector<40x256xf32> -> vector<40x256xf32>
    %20 = arith.truncf %19 : vector<40x256xf32> to vector<40x256xbf16>
    %c0_17 = arith.constant 0 : index
    %c0_18 = arith.constant 0 : index
    %21 = vector.load %arg10[%c0_17, %c0_18] : memref<128x256xbf16, #tpu.memory_space<vmem>>, vector<40x256xbf16>
    tpu.vector_store %arg10[%c0_17, %c0_18], %20 {strides = array<i32>} : memref<128x256xbf16, #tpu.memory_space<vmem>>, vector<40x256xbf16>,
    %22 = vector.extract_strided_slice %13 {offsets = [40, 0], sizes = [16, 128], strides = [1, 1]} : vector<128x128xbf16> to vector<16x128xbf16>
    %c1 = arith.constant 1 : index
    %c0_19 = arith.constant 0 : index
    %c0_20 = arith.constant 0 : index
    %23 = vector.load %arg6[%c1, %c0_19, %c0_20] : memref<4x128x256xbf16, #tpu.memory_space<vmem>>, vector<1x128x256xbf16>
    %24 = vector.shape_cast %23 : vector<1x128x256xbf16> to vector<128x256xbf16>
    %cst_21 = arith.constant dense<0.000000e+00> : vector<16x256xf32>
    %25 = tpu.matmul %22, %24, %cst_21 {dimension_numbers = #tpu.dot_dimension_numbers<[1], [0], [0], [1], [0, 0, 1, 1], [], []>} : vector<16x128xbf16>, vector<128x256xbf16>, vector<16x256xf32> -> vector<16x256xf32>
    %26 = arith.truncf %25 : vector<16x256xf32> to vector<16x256xbf16>
    %c40 = arith.constant 40 : index
    %c0_22 = arith.constant 0 : index
    %27 = vector.load %arg10[%c40, %c0_22] : memref<128x256xbf16, #tpu.memory_space<vmem>>, vector<16x256xbf16>
    tpu.vector_store %arg10[%c40, %c0_22], %26 {strides = array<i32>} : memref<128x256xbf16, #tpu.memory_space<vmem>>, vector<16x256xbf16>,
    %28 = vector.extract_strided_slice %13 {offsets = [56, 0], sizes = [8, 128], strides = [1, 1]} : vector<128x128xbf16> to vector<8x128xbf16>
    %c2 = arith.constant 2 : index
    %c0_23 = arith.constant 0 : index
    %c0_24 = arith.constant 0 : index
    %29 = vector.load %arg6[%c2, %c0_23, %c0_24] : memref<4x128x256xbf16, #tpu.memory_space<vmem>>, vector<1x128x256xbf16>
    %30 = vector.shape_cast %29 : vector<1x128x256xbf16> to vector<128x256xbf16>
    %cst_25 = arith.constant dense<0.000000e+00> : vector<8x256xf32>
    %31 = tpu.matmul %28, %30, %cst_25 {dimension_numbers = #tpu.dot_dimension_numbers<[1], [0], [0], [1], [0, 0, 1, 1], [], []>} : vector<8x128xbf16>, vector<128x256xbf16>, vector<8x256xf32> -> vector<8x256xf32>
    %32 = arith.truncf %31 : vector<8x256xf32> to vector<8x256xbf16>
    %c56 = arith.constant 56 : index
    %c0_26 = arith.constant 0 : index
    %33 = vector.load %arg10[%c56, %c0_26] : memref<128x256xbf16, #tpu.memory_space<vmem>>, vector<8x256xbf16>
    tpu.vector_store %arg10[%c56, %c0_26], %32 {strides = array<i32>} : memref<128x256xbf16, #tpu.memory_space<vmem>>, vector<8x256xbf16>,
    %34 = vector.extract_strided_slice %13 {offsets = [64, 0], sizes = [8, 128], strides = [1, 1]} : vector<128x128xbf16> to vector<8x128xbf16>
    %c3 = arith.constant 3 : index
    %c0_27 = arith.constant 0 : index
    %c0_28 = arith.constant 0 : index
    %35 = vector.load %arg6[%c3, %c0_27, %c0_28] : memref<4x128x256xbf16, #tpu.memory_space<vmem>>, vector<1x128x256xbf16>
    %36 = vector.shape_cast %35 : vector<1x128x256xbf16> to vector<128x256xbf16>
    %cst_29 = arith.constant dense<0.000000e+00> : vector<8x256xf32>
    %37 = tpu.matmul %34, %36, %cst_29 {dimension_numbers = #tpu.dot_dimension_numbers<[1], [0], [0], [1], [0, 0, 1, 1], [], []>} : vector<8x128xbf16>, vector<128x256xbf16>, vector<8x256xf32> -> vector<8x256xf32>
    %38 = arith.truncf %37 : vector<8x256xf32> to vector<8x256xbf16>
    %c64 = arith.constant 64 : index
    %c0_30 = arith.constant 0 : index
    %39 = vector.load %arg10[%c64, %c0_30] : memref<128x256xbf16, #tpu.memory_space<vmem>>, vector<8x256xbf16>
    tpu.vector_store %arg10[%c64, %c0_30], %38 {strides = array<i32>} : memref<128x256xbf16, #tpu.memory_space<vmem>>, vector<8x256xbf16>,
    %c0_31 = arith.constant 0 : index
    %c0_32 = arith.constant 0 : index
    %40 = vector.load %arg7[%c0_31, %c0_32] : memref<128x256xbf16, #tpu.memory_space<vmem>>, vector<128x256xbf16>
    %cst_33 = arith.constant dense<0.000000e+00> : vector<256x256xf32>
    %41 = tpu.matmul %1, %40, %cst_33 {dimension_numbers = #tpu.dot_dimension_numbers<[1], [0], [0], [1], [0, 0, 1, 1], [], []>} : vector<256x128xbf16>, vector<128x256xbf16>, vector<256x256xf32> -> vector<256x256xf32>
    %c0_34 = arith.constant 0 : index
    %c0_35 = arith.constant 0 : index
    %42 = vector.load %arg3[%c0_34, %c0_35] : memref<256x128xbf16, #tpu.memory_space<vmem>>, vector<256x128xbf16>
    %c0_36 = arith.constant 0 : index
    %c0_37 = arith.constant 0 : index
    %43 = vector.load %arg10[%c0_36, %c0_37] : memref<128x256xbf16, #tpu.memory_space<vmem>>, vector<128x256xbf16>
    %cst_38 = arith.constant dense<0.000000e+00> : vector<256x256xf32>
    %44 = tpu.matmul %42, %43, %cst_38 {dimension_numbers = #tpu.dot_dimension_numbers<[1], [0], [0], [1], [0, 0, 1, 1], [], []>} : vector<256x128xbf16>, vector<128x256xbf16>, vector<256x256xf32> -> vector<256x256xf32>
    %45 = arith.addf %41, %44 : vector<256x256xf32>
    %c0_39 = arith.constant 0 : index
    %c0_40 = arith.constant 0 : index
    %46 = vector.load %arg8[%c0_39, %c0_40] : memref<1x256xf32, #tpu.memory_space<vmem>>, vector<1x256xf32>
    %47 = vector.broadcast %46 : vector<1x256xf32> to vector<256x256xf32>
    %48 = arith.addf %45, %47 : vector<256x256xf32>
    %cst_41 = arith.constant 0.000000e+00 : f32
    %49 = vector.broadcast %cst_41 : f32 to vector<256x256xf32>
    %50 = arith.maximumf %48, %49 : vector<256x256xf32>
    %51 = arith.truncf %50 : vector<256x256xf32> to vector<256x256xbf16>
    %c0_42 = arith.constant 0 : index
    %c0_43 = arith.constant 0 : index
    %c0_44 = arith.constant 0 : index
    %52 = vector.load %arg9[%c0_42, %c0_43, %c0_44] : memref<1x256x256xbf16, #tpu.memory_space<vmem>>, vector<1x256x256xbf16>
    %53 = vector.shape_cast %52 : vector<1x256x256xbf16> to vector<256x256xbf16>
    %54 = vector.shape_cast %51 : vector<256x256xbf16> to vector<1x256x256xbf16>
    tpu.vector_store %arg9[%c0_42, %c0_43, %c0_44], %54 {strides = array<i32>} : memref<1x256x256xbf16, #tpu.memory_space<vmem>>, vector<1x256x256xbf16>,
    return
  }
  func.func @transform_0(%arg0: i32) -> (i32, i32, i32) {
    %c0_i32 = arith.constant 0 : i32
    %c0_i32_0 = arith.constant 0 : i32
    %c0_i32_1 = arith.constant 0 : i32
    return %arg0, %c0_i32, %c0_i32_0 : i32, i32, i32
  }
  func.func @transform_1(%arg0: i32) -> (i32, i32) {
    %c0_i32 = arith.constant 0 : i32
    %c0_i32_0 = arith.constant 0 : i32
    %c0_i32_1 = arith.constant 0 : i32
    return %c0_i32, %c0_i32_0 : i32, i32
  }
  func.func @transform_2(%arg0: i32) -> (i32, i32) {
    %c0_i32 = arith.constant 0 : i32
    %c0_i32_0 = arith.constant 0 : i32
    %c0_i32_1 = arith.constant 0 : i32
    return %c0_i32, %c0_i32_0 : i32, i32
  }
  func.func @transform_3(%arg0: i32) -> (i32, i32) {
    %c0_i32 = arith.constant 0 : i32
    %c0_i32_0 = arith.constant 0 : i32
    %c0_i32_1 = arith.constant 0 : i32
    return %c0_i32, %c0_i32_0 : i32, i32
  }
  func.func @transform_4(%arg0: i32) -> (i32, i32) {
    %c0_i32 = arith.constant 0 : i32
    %c0_i32_0 = arith.constant 0 : i32
    %c0_i32_1 = arith.constant 0 : i32
    return %c0_i32, %c0_i32_0 : i32, i32
  }
  func.func @transform_5(%arg0: i32) -> (i32, i32, i32) {
    %c0_i32 = arith.constant 0 : i32
    %c0_i32_0 = arith.constant 0 : i32
    %c0_i32_1 = arith.constant 0 : i32
    %c0_i32_2 = arith.constant 0 : i32
    return %c0_i32, %c0_i32_0, %c0_i32_1 : i32, i32, i32
  }
  func.func @transform_6(%arg0: i32) -> (i32, i32) {
    %c0_i32 = arith.constant 0 : i32
    %c0_i32_0 = arith.constant 0 : i32
    %c0_i32_1 = arith.constant 0 : i32
    return %c0_i32, %c0_i32_0 : i32, i32
  }
  func.func @transform_7(%arg0: i32) -> (i32, i32) {
    %c0_i32 = arith.constant 0 : i32
    %c0_i32_0 = arith.constant 0 : i32
    %c0_i32_1 = arith.constant 0 : i32
    return %c0_i32, %c0_i32_0 : i32, i32
  }
  func.func @transform_8(%arg0: i32) -> (i32, i32, i32) {
    %c0_i32 = arith.constant 0 : i32
    %c0_i32_0 = arith.constant 0 : i32
    %c0_i32_1 = arith.constant 0 : i32
    return %arg0, %c0_i32, %c0_i32_0 : i32, i32, i32
  }
}

</mosaic_0001>

<bundles_post_ra>
// kernel: _lambda_.1
= control target key start
LH: loop header
LB: loop body
LE: loop exit
PB: predicated region body
PF: predicated region fallthrough
CT: control target
= control target key end

     0   :  { %13 = vsyncpa [#allocation4], 0  ;;  %s4314_s0 = inlined_call_operand.vmem [shape: bf16[2,256,128], index: 0, kind: input, shape index: {}]   ;;  %s4315_s1 = inlined_call_operand.vmem [shape: f32[128,256], index: 1, kind: input, shape index: {}]   ;;  %s4316_s2 = inlined_call_operand.vmem [shape: bf16[256,128], index: 2, kind: input, shape index: {}]   ;;  %s4317_s3 = inlined_call_operand.vmem [shape: bf16[128,128], index: 3, kind: input, shape index: {}]   ;;  %s4318_s4 = inlined_call_operand.vmem [shape: f32[1,128], index: 4, kind: input, shape index: {}]   ;;  %s4319_s5 = inlined_call_operand.vmem [shape: bf16[4,128,256], index: 5, kind: input, shape index: {}]   ;;  %s4320_s6 = inlined_call_operand.vmem [shape: bf16[128,256], index: 6, kind: input, shape index: {}]   ;;  %s4321_s7 = inlined_call_operand.vmem [shape: f32[1,256], index: 7, kind: input, shape index: {}]   ;;  %s4322_s8 = inlined_call_operand.hbm [shape: bf16[2,256,256], index: 8, kind: output, shape index: {}]  }
   0x1   :  { %15 = vsyncpa [#allocation4 + $0x1], 0  ;;  %s3362_s27 = smov 0   ;;  %s3364_s28 = smov 0  }
   0x2   :  { %s3366_s29 = smov 0   ;;  %s3368_s30 = smov 0  }
   0x3 LB: > { %s3383_s9 = sadd.s32 4294967295, %s3311_s30   ;;  %s2528_s10 = sadd.s32 4294967294, %s3311_s30   ;;  %s3311_s30 = sphi %s3368_s30, %s4344_s30   ;;  %s3307_s29 = sphi %s3366_s29, %s4343_s29   ;;  %s3303_s28 = sphi %s3364_s28, %s4342_s28   ;;  %s3299_s27 = sphi %s3362_s27, %s4341_s27  }
   0x4   : > { %s3387_s11 = sadd.s32 1, %s3311_s30   ;;  %s201_s12 = sadd.s32 1, %s3307_s29 }
   0x5   : > { %s198_s13 = ssub.s32 %s3311_s30, %s3387_s11  ;;  %p211_p0 = scmp.ne.s32.totalorder %s3307_s29, %s3303_s28 }
   0x6   : > { %p199_p1 = scmp.eq.s32.totalorder %s198_s13, 0  ;;  %p212_p2 = scmp.eq.s32.totalorder %s3383_s9, 1 }
   0x7   : > { %p217_p3 = scmp.ne.s32.totalorder %s3303_s28, %s3299_s27  ;;  %p218_p4 = scmp.eq.s32.totalorder %s2528_s10, 1 }
   0x8   : > { %s3398_s14 = scalar_select %p199_p1, %s3307_s29, %s201_s12  }
   0x9   : > { %p3400_p5 = por %p212_p2, %p211_p0  ;;  %p3404_p6 = por %p218_p4, %p217_p3 }
   0xa   : > { %p2531_p7 = scmp.ge.s32.totalorder %s3311_s30, 1  ;;  %p265_p8 = scmp.lt.s32.totalorder %s3311_s30, 3 }
   0xc   : > { %p266_p9 = pnand %p2531_p7, %p265_p8 }
   0xe   : > { %269 = sbr.rel (%p266_p9) target bundleno = 1172 (0x494), region = 52 }
  0x15   : > { %p299_p10 = scmp.lt.s32.totalorder %s3383_s9, 1  ;;  %v338_v0 = vld [vmem:[%s4315_s1 + $0x8] sm:$0xff]  ;;  %v3089_v13 = vld [vmem:[%s4317_s3] sm:$0xff]   ;;  %v3091_v17 = vld [vmem:[%s4317_s3 + $0x10] sm:$0xff]   ;;  %vm935_vm0 = vcmask 1043456   ;;  %s2774_s24 = sshll.u32 %s3383_s9, 12 }
  0x16   : > { %465 = vmatprep.mubr.f32.mxu0 %v338_v0  ;;  %v3090_v14 = vld [vmem:[%s4317_s3 + $0x8] sm:$0xff]   ;;  %2871 = vmatprep.subr.bf16.mxu1 %v3089_v13  ;;  %v3092_v19 = vld [vmem:[%s4317_s3 + $0x18] sm:$0xff]   ;;  %v337_v21 = vld [vmem:[%s4315_s1] sm:$0xff]  ;;  %s4265_s12 = scalar_lea.hbm %s4322_s8, %s2774_s24  ;;  %s3314_s17 = smov [#allocation3]  }
  0x17   : > { %s300_s19 = scalar_select %p299_p10, %s3383_s9, 1  ;;  %2872 = vmatpush3.bf16.msra.mxu1 %v3089_v13  ;;  %v340_v22 = vld [vmem:[%s4315_s1 + $0x18] sm:$0xff]  ;;  %v339_v23 = vld [vmem:[%s4315_s1 + $0x10] sm:$0xff]  ;;  %v342_v24 = vld [vmem:[%s4315_s1 + $0x28] sm:$0xff] }
  0x18   : > { %2873 = vmatprep.subr.bf16.mxu1 %v3090_v14  ;;  %v341_v25 = vld [vmem:[%s4315_s1 + $0x20] sm:$0xff]  ;;  %v344_v26 = vld [vmem:[%s4315_s1 + $0x38] sm:$0xff]  ;;  %v343_v27 = vld [vmem:[%s4315_s1 + $0x30] sm:$0xff]  ;;  %s3253_s18 = sshll.u32 %s3314_s17, 4  ;;  %s3254_s18 = int_to_ptr.vmem [resolvable:$false] %s3253_s18 }
  0x19   : > { %s2741_s20 = sshll.u32 %s300_s19, 7  ;;  %v346_v28 = vld [vmem:[%s4315_s1 + $0x48] sm:$0xff]  ;;  %v345_v29 = vld [vmem:[%s4315_s1 + $0x40] sm:$0xff]  ;;  %v348_v30 = vld [vmem:[%s4315_s1 + $0x58] sm:$0xff] }
  0x1a   : > { %s3418_s23 = scalar_lea.vmem %s4314_s0, %s2741_s20  ;;  %v347_v31 = vld [vmem:[%s4315_s1 + $0x50] sm:$0xff]  ;;  %v350_v32 = vld [vmem:[%s4315_s1 + $0x68] sm:$0xff]  ;;  %v349_v33 = vld [vmem:[%s4315_s1 + $0x60] sm:$0xff]  ;;  %s296_s20 = sand.u32 1, %s3303_s28  }
  0x1b   : > { %v3073_v1 = vld [vmem:[%s3418_s23 + $0x40] sm:$0xff]   ;;  %v3075_v3 = vld [vmem:[%s3418_s23 + $0x48] sm:$0xff]   ;;  %v3077_v5 = vld [vmem:[%s3418_s23 + $0x50] sm:$0xff]   ;;  %2874 = vmatpush3.bf16.msra.mxu1 %v3090_v14  ;;  %s2532_s21 = sshll.u32 %s296_s20, 8  ;;  %s4273_s13 = scalar_lea.sflag [#allocation4], %s296_s20 }
  0x1c   : > { %v3074_v2 = vld [vmem:[%s3418_s23] sm:$0xff]   ;;  %2904 = vmatprep.subr.bf16.mxu0 %v3073_v1  ;;  %v3076_v4 = vld [vmem:[%s3418_s23 + $0x8] sm:$0xff]   ;;  %v3078_v6 = vld [vmem:[%s3418_s23 + $0x10] sm:$0xff]   ;;  %2875 = vmatprep.subr.bf16.mxu1 %v3091_v17  ;;  %s4117_s22 = scalar_lea.vmem [#allocation3], %s2532_s21 }
  0x1d   : > { %2906 = vmatpush3.bf16.msra.mxu0 %v3074_v2  ;;  %v3079_v7 = vld [vmem:[%s3418_s23 + $0x58] sm:$0xff]   ;;  %v3081_v9 = vld [vmem:[%s3418_s23 + $0x60] sm:$0xff]   ;;  %v3083_v11 = vld [vmem:[%s3418_s23 + $0x68] sm:$0xff]   ;;  %s2466_s25 = sshll.u32 %s4117_s22, 4  ;;  %s4267_s25 = int_to_ptr.vmem [resolvable:$true] %s2466_s25 }
  0x1e   : > { %2908 = vmatprep.subr.bf16.mxu0 %v3075_v3  ;;  %v3080_v8 = vld [vmem:[%s3418_s23 + $0x18] sm:$0xff]   ;;  %v3082_v10 = vld [vmem:[%s3418_s23 + $0x20] sm:$0xff]   ;;  %v3084_v12 = vld [vmem:[%s3418_s23 + $0x28] sm:$0xff]   ;;  %s3249_s9 = scalar_lea.vmem %s4267_s25, 4096  ;;  %p3256_p0 = scmp.lt.s32.totalorder %s4267_s25, %s3254_s18 }
  0x1f   : > { %v3085_v15 = vld [vmem:[%s3418_s23 + $0x70] sm:$0xff]   ;;  %v3087_v18 = vld [vmem:[%s3418_s23 + $0x78] sm:$0xff]   ;;  %2876 = vmatpush3.bf16.msra.mxu1 %v3091_v17  ;;  %v354_v36 = vld [vmem:[%s4315_s1 + $0x88] sm:$0xff]  ;;  %p3250_p11 = scmp.ne.s32.totalorder %s4267_s25, %s3249_s9 }
  0x20   : > { %v3086_v16 = vld [vmem:[%s3418_s23 + $0x30] sm:$0xff]   ;;  %v3088_v20 = vld [vmem:[%s3418_s23 + $0x38] sm:$0xff]   ;;  %2877 = vmatprep.subr.bf16.mxu1 %v3092_v19  ;;  %v353_v37 = vld [vmem:[%s4315_s1 + $0x80] sm:$0xff] }
  0x21   : > { %2910 = vmatpush3.bf16.msra.mxu0 %v3076_v4  ;;  %v352_v34 = vld [vmem:[%s4315_s1 + $0x78] sm:$0xff]  ;;  %v351_v35 = vld [vmem:[%s4315_s1 + $0x70] sm:$0xff]  ;;  %v358_v40 = vld [vmem:[%s4315_s1 + $0xa8] sm:$0xff]  ;;  %p3251_p12 = pnand %p3250_p11, %p3400_p5 }
  0x22   : > { %2912 = vmatprep.subr.bf16.mxu0 %v3077_v5  ;;  %v356_v38 = vld [vmem:[%s4315_s1 + $0x98] sm:$0xff]  ;;  %v355_v39 = vld [vmem:[%s4315_s1 + $0x90] sm:$0xff]  ;;  %v357_v41 = vld [vmem:[%s4315_s1 + $0xa0] sm:$0xff] }
  0x23   : > { %2878 = vmatpush3.bf16.msra.mxu1 %v3092_v19  ;;  %v360_v42 = vld [vmem:[%s4315_s1 + $0xb8] sm:$0xff]  ;;  %v359_v43 = vld [vmem:[%s4315_s1 + $0xb0] sm:$0xff]  ;;  %v362_v44 = vld [vmem:[%s4315_s1 + $0xc8] sm:$0xff]  ;;  %p3252_p13 = pneg %p3251_p12 }
  0x24   : > { %v3093_v45 = vld [vmem:[%s4317_s3 + $0x20] sm:$0xff]   ;;  %v364_v47 = vld [vmem:[%s4315_s1 + $0xd8] sm:$0xff]  ;;  %v3094_v48 = vld [vmem:[%s4317_s3 + $0x28] sm:$0xff]  }
  0x25   : > { %2914 = vmatpush3.bf16.msra.mxu0 %v3078_v6  ;;  %v361_v46 = vld [vmem:[%s4315_s1 + $0xc0] sm:$0xff]  ;;  %2879 = vmatprep.subr.bf16.mxu1 %v3093_v45  ;;  %v363_v49 = vld [vmem:[%s4315_s1 + $0xd0] sm:$0xff]  ;;  %v366_v50 = vld [vmem:[%s4315_s1 + $0xe8] sm:$0xff] }
  0x26   : > { %2916 = vmatprep.subr.bf16.mxu0 %v3079_v7  ;;  %v3095_v51 = vld [vmem:[%s4317_s3 + $0x30] sm:$0xff]   ;;  %v365_v52 = vld [vmem:[%s4315_s1 + $0xe0] sm:$0xff]  ;;  %v368_v53 = vld [vmem:[%s4315_s1 + $0xf8] sm:$0xff] }
  0x27   : > { %2880 = vmatpush3.bf16.msra.mxu1 %v3093_v45  ;;  %v3096_v54 = vld [vmem:[%s4317_s3 + $0x38] sm:$0xff]   ;;  %v367_v55 = vld [vmem:[%s4315_s1 + $0xf0] sm:$0xff]  ;;  %v3097_v56 = vld [vmem:[%s4319_s5 + $0x80] ss:$8 sps:$4 sm:$0xff]  }
  0x28   : > { %2881 = vmatprep.subr.bf16.mxu1 %v3094_v48  ;;  %v3099_v57 = vld [vmem:[%s4319_s5 + $0x84] ss:$8 sps:$4 sm:$0xff]   ;;  %v3102_v58 = vld [vmem:[%s4319_s5 + $0x94] ss:$8 sps:$4 sm:$0xff]   ;;  %v3100_v60 = vld [vmem:[%s4319_s5 + $0x90] ss:$8 sps:$4 sm:$0xff]  }
  0x29   : > { %2918 = vmatpush3.bf16.msra.mxu0 %v3080_v8  ;;  %v3105_v59 = vld [vmem:[%s4319_s5 + $0x4] ss:$8 sps:$4 sm:$0xff]   ;;  %v3109_v62 = vld [vmem:[%s4319_s5 + $0xa0] ss:$8 sps:$4 sm:$0xff]   ;;  %v3120_v63 = vld [vmem:[%s4319_s5 + $0xb4] ss:$8 sps:$4 sm:$0xff]  }
  0x2a   : > { %2920 = vmatprep.subr.bf16.mxu0 %v3081_v9  ;;  %v3111_v61 = vld [vmem:[%s4319_s5 + $0xa4] ss:$8 sps:$4 sm:$0xff]   ;;  %v3118_v0 = vld [vmem:[%s4319_s5 + $0xb0] ss:$8 sps:$4 sm:$0xff]   ;;  %v3127_v1 = vld [vmem:[%s4319_s5 + $0xc0] ss:$8 sps:$4 sm:$0xff]  }
  0x2b   : > { %2882 = vmatpush3.bf16.msra.mxu1 %v3094_v48  ;;  %v3129_v2 = vld [vmem:[%s4319_s5 + $0xc4] ss:$8 sps:$4 sm:$0xff]   ;;  %v3108_v19 = vld [vmem:[%s4319_s5 + $0x14] ss:$8 sps:$4 sm:$0xff]  }
  0x2c   : > { %2883 = vmatprep.subr.bf16.mxu1 %v3095_v51 }
  0x2d   : > { %2922 = vmatpush3.bf16.msra.mxu0 %v3082_v10 }
  0x2e   : > { %2924 = vmatprep.subr.bf16.mxu0 %v3083_v11 }
  0x2f   : > { %2884 = vmatpush3.bf16.msra.mxu1 %v3095_v51 }
  0x30   : > { %2885 = vmatprep.subr.bf16.mxu1 %v3096_v54 }
  0x31   : > { %2926 = vmatpush3.bf16.msra.mxu0 %v3084_v12 }
  0x32   : > { %2928 = vmatprep.subr.bf16.mxu0 %v3085_v15 }
  0x33   : > { %2886 = vmatpush3.bf16.msra.mxu1 %v3096_v54 }
  0x34   : > { %843 = vmatprep.subr.bf16.mxu1 %v3105_v59 }
  0x35   : > { %2930 = vmatpush3.bf16.msra.mxu0 %v3086_v16  ;;  %v3103_v16 = vld [vmem:[%s4319_s5] ss:$8 sps:$4 sm:$0xff]  }
  0x36   : > { %2932 = vmatprep.subr.bf16.mxu0 %v3087_v18 }
  0x39   : > { %2934 = vmatpush3.bf16.msra.mxu0 %v3088_v20 }
  0x3a   : > { %1020 = vmatprep.subr.bf16.mxu0 %v3099_v57 }
  0x3c   : > { %466 = vmatmul.mubr.f32.vlgmr.msra.gmra.mrb[0].mxu0 %v337_v21 }
  0x3d   : > { %470 = vmatprep.mubr.f32.mxu0 %v340_v22  ;;  %1021 = vmatpush1.bf16.msra.mxu0 %v3097_v56  ;;  %v3106_v22 = vld [vmem:[%s4319_s5 + $0x10] ss:$8 sps:$4 sm:$0xff]  }
  0x3e   : > { %1022 = vmatprep.subr.bf16.mxu0 %v3102_v58 }
  0x40   : > { %471 = vmatmul.mubr.f32.gmra.mrb[2].mxu0 %v339_v23 }
  0x41   : > { %475 = vmatprep.mubr.f32.mxu0 %v342_v24  ;;  %1023 = vmatpush1.bf16.msra.mxu0 %v3100_v60  ;;  %v3114_v24 = vld [vmem:[%s4319_s5 + $0x24] ss:$8 sps:$4 sm:$0xff]  }
  0x42   : > { %1024 = vmatprep.subr.bf16.mxu0 %v3111_v61 }
  0x44   : > { %476 = vmatmul.mubr.f32.gmra.mrb[4].mxu0 %v341_v25 }
  0x45   : > { %480 = vmatprep.mubr.f32.mxu0 %v344_v26  ;;  %1025 = vmatpush1.bf16.msra.mxu0 %v3109_v62 }
  0x46   : > { %1026 = vmatprep.subr.bf16.mxu0 %v3120_v63 }
  0x48   : > { %481 = vmatmul.mubr.f32.gmra.mrb[6].mxu0 %v343_v27  ;;  %v3112_v27 = vld [vmem:[%s4319_s5 + $0x20] ss:$8 sps:$4 sm:$0xff]  }
  0x49   : > { %485 = vmatprep.mubr.f32.mxu0 %v346_v28  ;;  %1027 = vmatpush1.bf16.msra.mxu0 %v3118_v0 }
  0x4a   : > { %1028 = vmatprep.subr.bf16.mxu0 %v3129_v2 }
  0x4c   : > { %486 = vmatmul.mubr.f32.gmra.mrb[8].mxu0 %v345_v29 }
  0x4d   : > { %490 = vmatprep.mubr.f32.mxu0 %v348_v30  ;;  %1029 = vmatpush1.bf16.msra.mxu0 %v3127_v1  ;;  %v3117_v30 = vld [vmem:[%s4319_s5 + $0x34] ss:$8 sps:$4 sm:$0xff]  }
  0x50   : > { %491 = vmatmul.mubr.f32.gmra.mrb[10].mxu0 %v347_v31 }
  0x51   : > { %495 = vmatprep.mubr.f32.mxu0 %v350_v32 }
  0x54   : > { %496 = vmatmul.mubr.f32.gmra.mrb[12].mxu0 %v349_v33  ;;  %v3115_v33 = vld [vmem:[%s4319_s5 + $0x30] ss:$8 sps:$4 sm:$0xff]  }
  0x55   : > { %500 = vmatprep.mubr.f32.mxu0 %v352_v34 }
  0x58   : > { %501 = vmatmul.mubr.f32.gmra.mrb[14].mxu0 %v351_v35  ;;  %v3123_v35 = vld [vmem:[%s4319_s5 + $0x44] ss:$8 sps:$4 sm:$0xff]  }
  0x59   : > { %505 = vmatprep.mubr.f32.mxu0 %v354_v36 }
  0x5c   : > { %506 = vmatmul.mubr.f32.gmra.mrb[16].mxu0 %v353_v37 }
  0x5d   : > { %510 = vmatprep.mubr.f32.mxu0 %v356_v38  ;;  %v3121_v38 = vld [vmem:[%s4319_s5 + $0x40] ss:$8 sps:$4 sm:$0xff]  }
  0x60   : > { %511 = vmatmul.mubr.f32.gmra.mrb[18].mxu0 %v355_v39 }
  0x61   : > { %515 = vmatprep.mubr.f32.mxu0 %v358_v40 }
  0x64   : > { %516 = vmatmul.mubr.f32.gmra.mrb[20].mxu0 %v357_v41  ;;  %v3126_v41 = vld [vmem:[%s4319_s5 + $0x54] ss:$8 sps:$4 sm:$0xff]  }
  0x65   : > { %520 = vmatprep.mubr.f32.mxu0 %v360_v42 }
  0x68   : > { %521 = vmatmul.mubr.f32.gmra.mrb[22].mxu0 %v359_v43 }
  0x69   : > { %525 = vmatprep.mubr.f32.mxu0 %v362_v44  ;;  %v3124_v44 = vld [vmem:[%s4319_s5 + $0x50] ss:$8 sps:$4 sm:$0xff]  }
  0x6c   : > { %526 = vmatmul.mubr.f32.gmra.mrb[24].mxu0 %v361_v46 }
  0x6d   : > { %530 = vmatprep.mubr.f32.mxu0 %v364_v47 }
  0x70   : > { %531 = vmatmul.mubr.f32.gmra.mrb[26].mxu0 %v363_v49 }
  0x71   : > { %535 = vmatprep.mubr.f32.mxu0 %v366_v50 }
  0x74   : > { %536 = vmatmul.mubr.f32.gmra.mrb[28].mxu0 %v365_v52 }
  0x75   : > { %540 = vmatprep.mubr.f32.mxu0 %v368_v53 }
  0x78   : > { %541 = vmatmul.mubr.f32.gmra.mrb[30].mxu0 %v367_v55 }
 0x10f   : > { %v2807_v3 = vpop.f32.mrb[0].mxu0 }
 0x110   : > { %v2808_v4 = vpop.f32.mrb[1].mxu0 }
 0x111   : > { %v2809_v5 = vadd.f32 %v2808_v4, %v2807_v3 }
 0x113   : > { %v2810_v6 = vpop.f32.mrb[2].mxu0 }
 0x114   : > { %v2811_v7 = vpop.f32.mrb[3].mxu0 }
 0x115   : > { %v2812_v8 = vadd.f32 %v2811_v7, %v2810_v6  ;;  %v3130_v7 = vld [vmem:[%s4319_s5 + $0x60] ss:$8 sps:$4 sm:$0xff]  }
 0x117   : > { %v2813_v9 = vpop.f32.mrb[4].mxu0  ;;  %v546_v10 = vpack.c.bf16 %v2812_v8, %v2809_v5  ;;  %v3132_v5 = vld [vmem:[%s4319_s5 + $0x64] ss:$8 sps:$4 sm:$0xff]   ;;  %v3135_v8 = vld [vmem:[%s4319_s5 + $0x74] ss:$8 sps:$4 sm:$0xff]  }
 0x118   : > { %v2814_v11 = vpop.f32.mrb[5].mxu0 }
 0x119   : > { %v2815_v12 = vadd.f32 %v2814_v11, %v2813_v9  ;;  %2887 = vmatprep.mubr.bf16.mxu1 %v546_v10  ;;  %v3133_v9 = vld [vmem:[%s4319_s5 + $0x70] ss:$8 sps:$4 sm:$0xff]   ;;  %v3141_v10 = vld [vmem:[%s4319_s5 + $0x104] ss:$8 sps:$4 sm:$0xff]  }
 0x11a   : > { %v3136_v11 = vld [vmem:[%s4319_s5 + $0xd0] ss:$8 sps:$4 sm:$0xff]  }
 0x11b   : > { %v2816_v13 = vpop.f32.mrb[6].mxu0 }
 0x11c   : > { %v2817_v14 = vpop.f32.mrb[7].mxu0 }
 0x11d   : > { %v2818_v15 = vadd.f32 %v2817_v14, %v2816_v13  ;;  %v3313_v13 = vmov 0   ;;  %v3142_v14 = vld [vmem:[%s4319_s5 + $0xe0] ss:$8 sps:$4 sm:$0xff]  }
 0x11e   : > { %735 = vst [vmem:[#allocation2 + $0x20] sm:$0xff] %v3313_v13  ;;  %736 = vst [vmem:[#allocation2 + $0x28] sm:$0xff] %v3313_v13  ;;  %1052 = vmatprep.mubr.bf16.mxu0 %v3313_v13 }
 0x11f   : > { %v547_v17 = vpack.c.bf16 %v2818_v15, %v2815_v12  ;;  %v2819_v18 = vpop.f32.mrb[8].mxu0  ;;  %v3138_v12 = vld [vmem:[%s4319_s5 + $0xd4] ss:$8 sps:$4 sm:$0xff]   ;;  %737 = vst [vmem:[#allocation2 + $0x30] sm:$0xff] %v3313_v13  ;;  %738 = vst [vmem:[#allocation2 + $0x38] sm:$0xff] %v3313_v13 }
 0x120   : > { %v2820_v20 = vpop.f32.mrb[9].mxu0  ;;  %739 = vst [vmem:[#allocation2 + $0x40] sm:$0xff] %v3313_v13  ;;  %740 = vst [vmem:[#allocation2 + $0x48] sm:$0xff] %v3313_v13  ;;  %1030 = vmatprep.subr.bf16.mxu0 %v3138_v12  ;;  %v3144_v15 = vld [vmem:[%s4319_s5 + $0xe4] ss:$8 sps:$4 sm:$0xff]  }
 0x121   : > { %v2821_v21 = vadd.f32 %v2820_v20, %v2819_v18  ;;  %2888 = vmatmul.mubr.bf16.vlgmr.msra.gmra.mrb[0].mxu1 %v547_v17  ;;  %1031 = vmatpush1.bf16.msra.mxu0 %v3136_v11  ;;  %v3151_v17 = vld [vmem:[%s4319_s5 + $0xf0] ss:$8 sps:$4 sm:$0xff]   ;;  %v3162_v18 = vld [vmem:[%s4319_s5 + $0x184] ss:$8 sps:$4 sm:$0xff]   ;;  %v3180_v11 = vld [vmem:[%s4319_s5 + $0x1b4] ss:$8 sps:$4 sm:$0xff]  }
 0x122   : > { %844 = vmatpush1.bf16.msra.mxu1 %v3103_v16  ;;  %1032 = vmatprep.subr.bf16.mxu0 %v3144_v15  ;;  %v3153_v16 = vld [vmem:[%s4319_s5 + $0xf4] ss:$8 sps:$4 sm:$0xff]  }
 0x123   : > { %v2822_v23 = vpop.f32.mrb[10].mxu0  ;;  %845 = vmatprep.subr.bf16.mxu1 %v3108_v19  ;;  %v3666_v19 = vld [vmem:[%s4318_s4] ss:$0 sm:$0xff] }
 0x124   : > { %v2823_v25 = vpop.f32.mrb[11].mxu0 }
 0x125   : > { %v2824_v26 = vadd.f32 %v2823_v25, %v2822_v23  ;;  %1033 = vmatpush1.bf16.msra.mxu0 %v3142_v14 }
 0x126   : > { %846 = vmatpush1.bf16.msra.mxu1 %v3106_v22  ;;  %1034 = vmatprep.subr.bf16.mxu0 %v3153_v16  ;;  %v3178_v16 = vld [vmem:[%s4319_s5 + $0x1b0] ss:$8 sps:$4 sm:$0xff]  }
 0x127   : > { %v548_v28 = vpack.c.bf16 %v2824_v26, %v2821_v21  ;;  %v2825_v29 = vpop.f32.mrb[12].mxu0  ;;  %847 = vmatprep.subr.bf16.mxu1 %v3114_v24 }
 0x128   : > { %v2826_v31 = vpop.f32.mrb[13].mxu0 }
 0x129   : > { %v2827_v32 = vadd.f32 %v2826_v31, %v2825_v29  ;;  %2891 = vmatprep.mubr.bf16.mxu1 %v548_v28  ;;  %1035 = vmatpush1.bf16.msra.mxu0 %v3151_v17 }
 0x12a   : > { %848 = vmatpush1.bf16.msra.mxu1 %v3112_v27  ;;  %1321 = vmatprep.subr.bf16.mxu0 %v3162_v18  ;;  %v3183_v18 = vld [vmem:[%s4319_s5 + $0x1c4] ss:$8 sps:$4 sm:$0xff]  }
 0x12b   : > { %v2828_v34 = vpop.f32.mrb[14].mxu0  ;;  %849 = vmatprep.subr.bf16.mxu1 %v3117_v30 }
 0x12c   : > { %v2829_v36 = vpop.f32.mrb[15].mxu0 }
 0x12d   : > { %v2830_v37 = vadd.f32 %v2829_v36, %v2828_v34  ;;  %v3145_v36 = vld [vmem:[%s4319_s5 + $0x110] ss:$8 sps:$4 sm:$0xff]  }
 0x12e   : > { %850 = vmatpush1.bf16.msra.mxu1 %v3115_v33  ;;  %v3139_v33 = vld [vmem:[%s4319_s5 + $0x100] ss:$8 sps:$4 sm:$0xff]  }
 0x12f   : > { %v549_v39 = vpack.c.bf16 %v2830_v37, %v2827_v32  ;;  %v2831_v40 = vpop.f32.mrb[16].mxu0  ;;  %851 = vmatprep.subr.bf16.mxu1 %v3123_v35  ;;  %v3147_v35 = vld [vmem:[%s4319_s5 + $0x114] ss:$8 sps:$4 sm:$0xff]   ;;  %v3150_v37 = vld [vmem:[%s4319_s5 + $0x124] ss:$8 sps:$4 sm:$0xff]  }
 0x130   : > { %v2832_v42 = vpop.f32.mrb[17].mxu0 }
 0x131   : > { %2892 = vmatmul.mubr.bf16.gmra.mrb[4].mxu1 %v549_v39  ;;  %v2833_v43 = vadd.f32 %v2832_v42, %v2831_v40  ;;  %v3156_v40 = vld [vmem:[%s4319_s5 + $0x134] ss:$8 sps:$4 sm:$0xff]  }
 0x132   : > { %852 = vmatpush1.bf16.msra.mxu1 %v3121_v38  ;;  %v3148_v38 = vld [vmem:[%s4319_s5 + $0x120] ss:$8 sps:$4 sm:$0xff]  }
 0x133   : > { %v2834_v45 = vpop.f32.mrb[18].mxu0  ;;  %853 = vmatprep.subr.bf16.mxu1 %v3126_v41 }
 0x134   : > { %v2835_v46 = vpop.f32.mrb[19].mxu0 }
 0x135   : > { %v2836_v47 = vadd.f32 %v2835_v46, %v2834_v45 }
 0x136   : > { %854 = vmatpush1.bf16.msra.mxu1 %v3124_v44 }
 0x137   : > { %v550_v48 = vpack.c.bf16 %v2836_v47, %v2833_v43  ;;  %v2837_v49 = vpop.f32.mrb[20].mxu0  ;;  %855 = vmatprep.subr.bf16.mxu1 %v3132_v5  ;;  %v3154_v47 = vld [vmem:[%s4319_s5 + $0x130] ss:$8 sps:$4 sm:$0xff]  }
 0x138   : > { %v2838_v50 = vpop.f32.mrb[21].mxu0 }
 0x139   : > { %v2839_v51 = vadd.f32 %v2838_v50, %v2837_v49  ;;  %2895 = vmatprep.mubr.bf16.mxu1 %v550_v48  ;;  %v3159_v49 = vld [vmem:[%s4319_s5 + $0x144] ss:$8 sps:$4 sm:$0xff]  }
 0x13a   : > { %856 = vmatpush1.bf16.msra.mxu1 %v3130_v7  ;;  %v3172_v7 = vld [vmem:[%s4319_s5 + $0x1a0] ss:$8 sps:$4 sm:$0xff]  }
 0x13b   : > { %v2840_v52 = vpop.f32.mrb[22].mxu0  ;;  %857 = vmatprep.subr.bf16.mxu1 %v3135_v8 }
 0x13c   : > { %v2841_v53 = vpop.f32.mrb[23].mxu0 }
 0x13d   : > { %v2842_v54 = vadd.f32 %v2841_v53, %v2840_v52 }
 0x13e   : > { %858 = vmatpush1.bf16.msra.mxu1 %v3133_v9 }
 0x13f   : > { %v551_v55 = vpack.c.bf16 %v2842_v54, %v2839_v51  ;;  %v2843_v56 = vpop.f32.mrb[24].mxu0  ;;  %1173 = vmatprep.subr.bf16.mxu1 %v3141_v10  ;;  %v3175_v10 = vld [vmem:[%s4319_s5 + $0x170] ss:$8 sps:$4 sm:$0xff]  }
 0x140   : > { %v2844_v57 = vpop.f32.mrb[25].mxu0 }
 0x141   : > { %2896 = vmatmul.mubr.bf16.gmra.mrb[8].mxu1 %v551_v55  ;;  %v2845_v58 = vadd.f32 %v2844_v57, %v2843_v56  ;;  %v3157_v55 = vld [vmem:[%s4319_s5 + $0x140] ss:$8 sps:$4 sm:$0xff]   ;;  %v3165_v57 = vld [vmem:[%s4319_s5 + $0x154] ss:$8 sps:$4 sm:$0xff]  }
 0x143   : > { %v2846_v59 = vpop.f32.mrb[26].mxu0 }
 0x144   : > { %v2847_v60 = vpop.f32.mrb[27].mxu0 }
 0x145   : > { %v2848_v61 = vadd.f32 %v2847_v60, %v2846_v59  ;;  %v3160_v60 = vld [vmem:[%s4319_s5 + $0x180] ss:$8 sps:$4 sm:$0xff]  }
 0x147   : > { %v552_v62 = vpack.c.bf16 %v2848_v61, %v2845_v58  ;;  %v2849_v63 = vpop.f32.mrb[28].mxu0  ;;  %v3163_v61 = vld [vmem:[%s4319_s5 + $0x150] ss:$8 sps:$4 sm:$0xff]  }
 0x148   : > { %v2850_v0 = vpop.f32.mrb[29].mxu0 }
 0x149   : > { %v2851_v1 = vadd.f32 %v2850_v0, %v2849_v63  ;;  %2899 = vmatprep.mubr.bf16.mxu1 %v552_v62  ;;  %v3168_v62 = vld [vmem:[%s4319_s5 + $0x194] ss:$8 sps:$4 sm:$0xff]   ;;  %v3171_v0 = vld [vmem:[%s4319_s5 + $0x164] ss:$8 sps:$4 sm:$0xff]  }
 0x14b   : > { %v2852_v2 = vpop.f32.mrb[30].mxu0 }
 0x14c   : > { %v2853_v3 = vpop.f32.mrb[31].mxu0 }
 0x14d   : > { %v2854_v4 = vadd.f32 %v2853_v3, %v2852_v2  ;;  %v3169_v2 = vld [vmem:[%s4319_s5 + $0x160] ss:$8 sps:$4 sm:$0xff]   ;;  %v3174_v3 = vld [vmem:[%s4319_s5 + $0x1a4] ss:$8 sps:$4 sm:$0xff]  }
 0x14f   : > { %v553_v6 = vpack.c.bf16 %v2854_v4, %v2851_v1  ;;  %v3166_v1 = vld [vmem:[%s4319_s5 + $0x190] ss:$8 sps:$4 sm:$0xff]   ;;  %v3177_v4 = vld [vmem:[%s4319_s5 + $0x174] ss:$8 sps:$4 sm:$0xff]  }
 0x151   : > { %2900 = vmatmul.mubr.bf16.gmra.mrb[12].mxu1 %v553_v6 }
 0x152   : > { %875 = vmatprep.mubr.bf16.mxu1 %v3313_v13 }
 0x1f4   : > { %v2889_v20 = vpop.f32.mrb[0].mxu1 }
 0x1f5   : > { %v668_v21 = vadd.f32 %v2889_v20, %v3666_v19  ;;  %v659_v22 = vpop.f32.mrb[1].mxu1 }
 0x1f6   : > { %v660_v23 = vadd.f32 %v3666_v19, %v659_v22  ;;  %v2890_v24 = vpop.f32.mrb[2].mxu1  ;;  %v3184_v22 = vld [vmem:[%s4319_s5 + $0x1d0] ss:$8 sps:$4 sm:$0xff]  }
 0x1f7   : > { %v671_v25 = vadd.f32 %v2890_v24, %v3666_v19  ;;  %v662_v26 = vpop.f32.mrb[3].mxu1  ;;  %v718_v28 = vmax.f32 %v668_v21, 0.0  ;;  %v3181_v21 = vld [vmem:[%s4319_s5 + $0x1c0] ss:$8 sps:$4 sm:$0xff]  }
 0x1f8   : > { %v663_v27 = vadd.f32 %v3666_v19, %v662_v26  ;;  %v716_v30 = vmax.f32 %v660_v23, 0.0  ;;  %v3189_v23 = vld [vmem:[%s4319_s5 + $0x1e4] ss:$8 sps:$4 sm:$0xff]   ;;  %v3187_v24 = vld [vmem:[%s4319_s5 + $0x1e0] ss:$8 sps:$4 sm:$0xff]  }
 0x1f9   : > { %v719_v29 = vmax.f32 %v671_v25, 0.0  ;;  %v3192_v25 = vld [vmem:[%s4319_s5 + $0x1f4] ss:$8 sps:$4 sm:$0xff]   ;;  %v3190_v26 = vld [vmem:[%s4319_s5 + $0x1f0] ss:$8 sps:$4 sm:$0xff]  }
 0x1fa   : > { %v717_v31 = vmax.f32 %v663_v27, 0.0 }
 0x1fb   : > { %v727_v32 = vpack.c.bf16 %v719_v29, %v718_v28 }
 0x1fc   : > { %v726_v34 = vpack.c.bf16 %v717_v31, %v716_v30  ;;  %v3777_v31 = vld [vmem:[%s4320_s6 + $0x4] ss:$8 sps:$4 sm:$0xff]  }
 0x1fe   : > { %876 = vmatmul.mubr.bf16.vlgmr.msra.gmra.mrb[16].mxu1 %v726_v34  ;;  %v3794_v34 = vld [vmem:[%s4320_s6 + $0x10] ss:$8 sps:$4 sm:$0xff]  }
 0x1ff   : > { %1174 = vmatpush1.bf16.msra.mxu1 %v3139_v33  ;;  %885 = vmatprep.mubr.bf16.mxu1 %v3313_v13  ;;  %v3789_v33 = vld [vmem:[%s4320_s6 + $0x14] ss:$8 sps:$4 sm:$0xff]  }
 0x200   : > { %1175 = vmatprep.subr.bf16.mxu1 %v3147_v35  ;;  %v3801_v35 = vld [vmem:[%s4320_s6 + $0x24] ss:$8 sps:$4 sm:$0xff]  }
 0x203   : > { %1176 = vmatpush1.bf16.msra.mxu1 %v3145_v36  ;;  %v3806_v36 = vld [vmem:[%s4320_s6 + $0x20] ss:$8 sps:$4 sm:$0xff]  }
 0x204   : > { %v2893_v39 = vpop.f32.mrb[4].mxu1  ;;  %1177 = vmatprep.subr.bf16.mxu1 %v3150_v37  ;;  %v3812_v37 = vld [vmem:[%s4320_s6 + $0x34] ss:$8 sps:$4 sm:$0xff]  }
 0x205   : > { %v684_v41 = vadd.f32 %v2893_v39, %v3666_v19  ;;  %v675_v42 = vpop.f32.mrb[5].mxu1  ;;  %v3825_v39 = vld [vmem:[%s4320_s6 + $0x44] ss:$8 sps:$4 sm:$0xff]  }
 0x206   : > { %v676_v43 = vadd.f32 %v3666_v19, %v675_v42  ;;  %v2894_v44 = vpop.f32.mrb[6].mxu1  ;;  %886 = vmatmul.mubr.bf16.gmra.mrb[20].mxu1 %v727_v32  ;;  %v3782_v32 = vld [vmem:[%s4320_s6] ss:$8 sps:$4 sm:$0xff]   ;;  %v3842_v42 = vld [vmem:[%s4320_s6 + $0x54] ss:$8 sps:$4 sm:$0xff]  }
 0x207   : > { %v687_v45 = vadd.f32 %v2894_v44, %v3666_v19  ;;  %1178 = vmatpush1.bf16.msra.mxu1 %v3148_v38  ;;  %v678_v46 = vpop.f32.mrb[7].mxu1  ;;  %895 = vmatprep.mubr.bf16.mxu1 %v3313_v13  ;;  %v722_v50 = vmax.f32 %v684_v41, 0.0  ;;  %v3818_v38 = vld [vmem:[%s4320_s6 + $0x30] ss:$8 sps:$4 sm:$0xff]   ;;  %v3854_v44 = vld [vmem:[%s4320_s6 + $0x64] ss:$8 sps:$4 sm:$0xff]  }
 0x208   : > { %v679_v48 = vadd.f32 %v3666_v19, %v678_v46  ;;  %1179 = vmatprep.subr.bf16.mxu1 %v3156_v40  ;;  %v720_v52 = vmax.f32 %v676_v43, 0.0  ;;  %v3830_v40 = vld [vmem:[%s4320_s6 + $0x40] ss:$8 sps:$4 sm:$0xff]   ;;  %v3837_v41 = vld [vmem:[%s4320_s6 + $0x50] ss:$8 sps:$4 sm:$0xff]  }
 0x209   : > { %v723_v51 = vmax.f32 %v687_v45, 0.0  ;;  %v3849_v43 = vld [vmem:[%s4320_s6 + $0x60] ss:$8 sps:$4 sm:$0xff]   ;;  %v3861_v45 = vld [vmem:[%s4320_s6 + $0x70] ss:$8 sps:$4 sm:$0xff]  }
 0x20a   : > { %v721_v53 = vmax.f32 %v679_v48, 0.0  ;;  %v3866_v46 = vld [vmem:[%s4320_s6 + $0x74] ss:$8 sps:$4 sm:$0xff]   ;;  %v3234_v48 = vld [vmem:[%s3418_s23 + $0x8] sm:$0xff]  }
 0x20b   : > { %v729_v54 = vpack.c.bf16 %v723_v51, %v722_v50  ;;  %1180 = vmatpush1.bf16.msra.mxu1 %v3154_v47  ;;  %v3233_v47 = vld [vmem:[%s3418_s23] sm:$0xff]   ;;  %v3236_v50 = vld [vmem:[%s3418_s23 + $0x18] sm:$0xff]  }
 0x20c   : > { %v728_v56 = vpack.c.bf16 %v721_v53, %v720_v52  ;;  %1181 = vmatprep.subr.bf16.mxu1 %v3159_v49  ;;  %v3235_v49 = vld [vmem:[%s3418_s23 + $0x10] sm:$0xff]   ;;  %v3237_v51 = vld [vmem:[%s3418_s23 + $0x20] sm:$0xff]   ;;  %v3238_v52 = vld [vmem:[%s3418_s23 + $0x28] sm:$0xff]  }
 0x20d   : > { %v937_v58 = vrot.slane %v729_v54, 4  ;;  %v3239_v53 = vld [vmem:[%s3418_s23 + $0x30] sm:$0xff]  }
 0x20e   : > { %v936_v59 = vrot.slane %v728_v56, 4  ;;  %896 = vmatmul.mubr.bf16.gmra.mrb[24].mxu1 %v728_v56 }
 0x20f   : > { %1182 = vmatpush1.bf16.msra.mxu1 %v3157_v55  ;;  %1205 = vmatprep.mubr.bf16.mxu1 %v3313_v13 }
 0x210   : > { %v938_v63 = vsel %vm935_vm0, %v936_v59, %v937_v58  ;;  %1183 = vmatprep.subr.bf16.mxu1 %v3165_v57 }
 0x211   : > { %1053 = vmatmul.mubr.bf16.vlgmr.msra.gmra.mrb[32].mxu0 %v938_v63 }
 0x212   : > { %1322 = vmatpush1.bf16.msra.mxu0 %v3160_v60  ;;  %1353 = vmatprep.mubr.bf16.mxu0 %v3313_v13  ;;  %v3240_v60 = vld [vmem:[%s3418_s23 + $0x38] sm:$0xff]  }
 0x213   : > { %1184 = vmatpush1.bf16.msra.mxu1 %v3163_v61  ;;  %1323 = vmatprep.subr.bf16.mxu0 %v3168_v62 }
 0x214   : > { %1185 = vmatprep.subr.bf16.mxu1 %v3171_v0  ;;  %v2897_v5 = vpop.f32.mrb[8].mxu1 }
 0x215   : > { %v691_v6 = vpop.f32.mrb[9].mxu1 }
 0x216   : > { %1324 = vmatpush1.bf16.msra.mxu0 %v3166_v1  ;;  %v692_v8 = vadd.f32 %v3666_v19, %v691_v6  ;;  %v2898_v9 = vpop.f32.mrb[10].mxu1 }
 0x217   : > { %1186 = vmatpush1.bf16.msra.mxu1 %v3169_v2  ;;  %1325 = vmatprep.subr.bf16.mxu0 %v3174_v3  ;;  %v694_v12 = vpop.f32.mrb[11].mxu1  ;;  %v3241_v3 = vld [vmem:[%s3418_s23 + $0x40] sm:$0xff]  }
 0x218   : > { %1187 = vmatprep.subr.bf16.mxu1 %v3177_v4  ;;  %v724_v14 = vmax.f32 %v692_v8, 0.0  ;;  %v695_v15 = vadd.f32 %v3666_v19, %v694_v12  ;;  %v3186_v19 = vld [vmem:[%s4319_s5 + $0x1d4] ss:$8 sps:$4 sm:$0xff]  }
 0x21a   : > { %1326 = vmatpush1.bf16.msra.mxu0 %v3172_v7  ;;  %v725_v17 = vmax.f32 %v695_v15, 0.0 }
 0x21b   : > { %1188 = vmatpush1.bf16.msra.mxu1 %v3175_v10  ;;  %1327 = vmatprep.subr.bf16.mxu0 %v3180_v11 }
 0x21c   : > { %v730_v20 = vpack.c.bf16 %v725_v17, %v724_v14  ;;  %v3242_v17 = vld [vmem:[%s3418_s23 + $0x48] sm:$0xff]  }
 0x21e   : > { %1206 = vmatmul.mubr.bf16.vlgmr.msra.gmra.mrb[28].mxu1 %v937_v58  ;;  %1328 = vmatpush1.bf16.msra.mxu0 %v3178_v16 }
 0x21f   : > { %1329 = vmatprep.subr.bf16.mxu0 %v3183_v18  ;;  %1558 = vmatprep.mubr.bf16.mxu1 %v3313_v13 }
 0x222   : > { %1330 = vmatpush1.bf16.msra.mxu0 %v3181_v21  ;;  %v3243_v21 = vld [vmem:[%s3418_s23 + $0x50] sm:$0xff]  }
 0x223   : > { %1331 = vmatprep.subr.bf16.mxu0 %v3186_v19 }
 0x224   : > { %v2901_v27 = vpop.f32.mrb[12].mxu1 }
 0x225   : > { %v705_v28 = vpop.f32.mrb[13].mxu1 }
 0x226   : > { %1332 = vmatpush1.bf16.msra.mxu0 %v3184_v22  ;;  %v2902_v29 = vpop.f32.mrb[14].mxu1 }
 0x227   : > { %1333 = vmatprep.subr.bf16.mxu0 %v3189_v23  ;;  %v707_v30 = vpop.f32.mrb[15].mxu1 }
 0x22a   : > { %1334 = vmatpush1.bf16.msra.mxu0 %v3187_v24 }
 0x22b   : > { %1335 = vmatprep.subr.bf16.mxu0 %v3192_v25 }
 0x22e   : > { %1336 = vmatpush1.bf16.msra.mxu0 %v3190_v26 }
 0x22f   : > { %1895 = vmatprep.subr.bf16.mxu0 %v3777_v31 }
 0x231   : > { %1354 = vmatmul.mubr.bf16.vlgmr.msra.gmra.mrb[36].mxu0 %v730_v20 }
 0x232   : > { %1927 = vmatprep.mubr.bf16.mxu0 %v3313_v13  ;;  %1896 = vmatpush1.bf16.msra.mxu0 %v3782_v32 }
 0x233   : > { %1897 = vmatprep.subr.bf16.mxu0 %v3789_v33 }
 0x236   : > { %1898 = vmatpush1.bf16.msra.mxu0 %v3794_v34 }
 0x237   : > { %1899 = vmatprep.subr.bf16.mxu0 %v3801_v35 }
 0x23a   : > { %1900 = vmatpush1.bf16.msra.mxu0 %v3806_v36 }
 0x23b   : > { %1901 = vmatprep.subr.bf16.mxu0 %v3812_v37 }
 0x23e   : > { %1902 = vmatpush1.bf16.msra.mxu0 %v3818_v38 }
 0x23f   : > { %1903 = vmatprep.subr.bf16.mxu0 %v3825_v39 }
 0x242   : > { %1904 = vmatpush1.bf16.msra.mxu0 %v3830_v40 }
 0x243   : > { %1905 = vmatprep.subr.bf16.mxu0 %v3842_v42 }
 0x246   : > { %1906 = vmatpush1.bf16.msra.mxu0 %v3837_v41 }
 0x247   : > { %1907 = vmatprep.subr.bf16.mxu0 %v3854_v44 }
 0x24a   : > { %1908 = vmatpush1.bf16.msra.mxu0 %v3849_v43 }
 0x24b   : > { %1909 = vmatprep.subr.bf16.mxu0 %v3866_v46 }
 0x24e   : > { %1910 = vmatpush1.bf16.msra.mxu0 %v3861_v45 }
 0x251   : > { %1928 = vmatmul.mubr.bf16.vlgmr.msra.gmra.mrb[40].mxu0 %v3233_v47  ;;  %v3244_v47 = vld [vmem:[%s3418_s23 + $0x58] sm:$0xff]  }
 0x252   : > { %1937 = vmatprep.mubr.bf16.mxu0 %v3313_v13 }
 0x259   : > { %1938 = vmatmul.mubr.bf16.gmra.mrb[44].mxu0 %v3234_v48 }
 0x25a   : > { %1947 = vmatprep.mubr.bf16.mxu0 %v3313_v13 }
 0x261   : > { %1948 = vmatmul.mubr.bf16.gmra.mrb[48].mxu0 %v3235_v49 }
 0x262   : > { %1957 = vmatprep.mubr.bf16.mxu0 %v3313_v13 }
 0x269   : > { %1958 = vmatmul.mubr.bf16.gmra.mrb[52].mxu0 %v3236_v50  ;;  %v3245_v50 = vld [vmem:[%s3418_s23 + $0x60] sm:$0xff]  }
 0x26a   : > { %1967 = vmatprep.mubr.bf16.mxu0 %v3313_v13 }
 0x271   : > { %1968 = vmatmul.mubr.bf16.gmra.mrb[56].mxu0 %v3237_v51 }
 0x272   : > { %1977 = vmatprep.mubr.bf16.mxu0 %v3313_v13 }
 0x279   : > { %1978 = vmatmul.mubr.bf16.gmra.mrb[60].mxu0 %v3238_v52 }
 0x27a   : > { %1987 = vmatprep.mubr.bf16.mxu0 %v3313_v13 }
 0x281   : > { %1988 = vmatmul.mubr.bf16.gmra.mrb[64].mxu0 %v3239_v53 }
 0x282   : > { %1997 = vmatprep.mubr.bf16.mxu0 %v3313_v13 }
 0x289   : > { %1998 = vmatmul.mubr.bf16.gmra.mrb[68].mxu0 %v3240_v60  ;;  %v3217_v60 = vld [vmem:[%s4316_s2] sm:$0xff]  }
 0x28a   : > { %2007 = vmatprep.mubr.bf16.mxu0 %v3313_v13 }
 0x291   : > { %2008 = vmatmul.mubr.bf16.gmra.mrb[72].mxu0 %v3241_v3 }
 0x292   : > { %2017 = vmatprep.mubr.bf16.mxu0 %v3313_v13 }
 0x299   : > { %2018 = vmatmul.mubr.bf16.gmra.mrb[76].mxu0 %v3242_v17 }
 0x29a   : > { %2027 = vmatprep.mubr.bf16.mxu0 %v3313_v13 }
 0x2a1   : > { %2028 = vmatmul.mubr.bf16.gmra.mrb[80].mxu0 %v3243_v21 }
 0x2a2   : > { %2037 = vmatprep.mubr.bf16.mxu0 %v3313_v13 }
 0x2a9   : > { %2038 = vmatmul.mubr.bf16.gmra.mrb[84].mxu0 %v3244_v47 }
 0x2aa   : > { %2047 = vmatprep.mubr.bf16.mxu0 %v3313_v13 }
 0x2b1   : > { %2048 = vmatmul.mubr.bf16.gmra.mrb[88].mxu0 %v3245_v50 }
 0x2b2   : > { %2057 = vmatprep.mubr.bf16.mxu0 %v3313_v13 }
 0x2d1   : > { %v877_v54 = vpop.f32.mrb[16].mxu1 }
 0x2d2   : > { %v879_v55 = vpop.f32.mrb[17].mxu1 }
 0x2d3   : > { %v881_v56 = vpop.f32.mrb[18].mxu1 }
 0x2d4   : > { %v904_v57 = vpack.c.bf16 %v881_v56, %v877_v54  ;;  %v883_v58 = vpop.f32.mrb[19].mxu1 }
 0x2d5   : > { %v905_v59 = vpack.c.bf16 %v883_v58, %v879_v55 }
 0x2d7   : > { %1526 = vmatprep.subr.bf16.mxu1 %v905_v59 }
 0x2d8   : > { %1527 = vmatpush1.bf16.msra.mxu1 %v904_v57  ;;  %v3246_v57 = vld [vmem:[%s3418_s23 + $0x68] sm:$0xff]  }
 0x2d9   : > { %v887_v61 = vpop.f32.mrb[20].mxu1  ;;  %2058 = vmatmul.mubr.bf16.gmra.mrb[92].mxu0 %v3246_v57 }
 0x2da   : > { %v889_v62 = vpop.f32.mrb[21].mxu1 }
 0x2db   : > { %v891_v63 = vpop.f32.mrb[22].mxu1 }
 0x2dc   : > { %v906_v0 = vpack.c.bf16 %v891_v63, %v887_v61  ;;  %v893_v1 = vpop.f32.mrb[23].mxu1  ;;  %v3218_v61 = vld [vmem:[%s4316_s2 + $0x8] sm:$0xff]  }
 0x2dd   : > { %v907_v2 = vpack.c.bf16 %v893_v1, %v889_v62 }
 0x2df   : > { %1528 = vmatprep.subr.bf16.mxu1 %v907_v2  ;;  %v3230_v2 = vld [vmem:[%s4316_s2 + $0x68] sm:$0xff]  }
 0x2e0   : > { %1529 = vmatpush1.bf16.msra.mxu1 %v906_v0 }
 0x2e1   : > { %v897_v4 = vpop.f32.mrb[24].mxu1 }
 0x2e2   : > { %v908_v5 = vpack.c.bf16 %v897_v4, %v897_v4  ;;  %v899_v6 = vpop.f32.mrb[25].mxu1 }
 0x2e3   : > { %v909_v7 = vpack.c.bf16 %v899_v6, %v899_v6  ;;  %v901_v8 = vpop.f32.mrb[26].mxu1 }
 0x2e4   : > { %914 = vst [vmem:[#allocation2 + $0x20] sm:$0xf] %v908_v5  ;;  %v902_v9 = vpop.f32.mrb[27].mxu1  ;;  %v1054_v10 = vpop.f32.mrb[32].mxu0 }
 0x2e5   : > { %915 = vst [vmem:[#allocation2 + $0x28] sm:$0xf] %v909_v7  ;;  %v1056_v11 = vpop.f32.mrb[33].mxu0  ;;  %v3231_v7 = vld [vmem:[%s4316_s2 + $0x70] sm:$0xff]  }
 0x2e6   : > { %v1058_v12 = vpop.f32.mrb[34].mxu0 }
 0x2e7   : > { %v1063_v14 = vpack.c.bf16 %v1058_v12, %v1054_v10  ;;  %v1060_v15 = vpop.f32.mrb[35].mxu0  ;;  %v3232_v12 = vld [vmem:[%s4316_s2 + $0x78] sm:$0xff]  }
 0x2e8   : > { %v1064_v16 = vpack.c.bf16 %v1060_v15, %v1056_v11 }
 0x2e9   : > { %v1067_v18 = vrot.slane %v1063_v14, 4 }
 0x2ea   : > { %v1068_v20 = vrot.slane %v1064_v16, 4 }
 0x2eb   : > { %1071 = vst [vmem:[#allocation2 + $0x30] ss:$-12 sps:$4 sm:$0xff] %v1067_v18  }
 0x2ec   : > { %1072 = vst [vmem:[#allocation2 + $0x38] ss:$-12 sps:$4 sm:$0xff] %v1068_v20  }
 0x2f1   : > { %v1207_v19 = vpop.f32.mrb[28].mxu1 }
 0x2f2   : > { %v1214_v22 = vpack.c.bf16 %v1207_v19, %v1207_v19  ;;  %v1209_v23 = vpop.f32.mrb[29].mxu1  ;;  %v1418_v29 = vld [vmem:[#allocation2 + $0x20] sm:$0xff]  ;;  %v3247_v19 = vld [vmem:[%s3418_s23 + $0x70] sm:$0xff]  }
 0x2f3   : > { %v1215_v24 = vpack.c.bf16 %v1209_v23, %v1209_v23  ;;  %v1211_v25 = vpop.f32.mrb[30].mxu1  ;;  %v1419_v26 = vld [vmem:[#allocation2 + $0x28] sm:$0xff] }
 0x2f4   : > { %v1218_v27 = vrot.slane %v1214_v22, 4  ;;  %v1212_v28 = vpop.f32.mrb[31].mxu1  ;;  %1530 = vmatprep.subr.bf16.mxu1 %v1419_v26  ;;  %v3248_v26 = vld [vmem:[%s3418_s23 + $0x78] sm:$0xff]   ;;  %s3255_s23 = scalar_lea.vmem %s3254_s18, 8192 }
 0x2f5   : > { %v1219_v30 = vrot.slane %v1215_v24, 4  ;;  %1531 = vmatpush1.bf16.msra.mxu1 %v1418_v29  ;;  %p3257_p1 = scmp.lt.s32.totalorder %s3255_s23, %s3249_s9 }
 0x2f6   : > { %1222 = vst [vmem:[#allocation2 + $0x30] sm:$0xf0] %v1218_v27 }
 0x2f7   : > { %1223 = vst [vmem:[#allocation2 + $0x38] sm:$0xf0] %v1219_v30  ;;  %p3258_p2 = por %p3257_p1, %p3256_p0 }
 0x2f9   : > { %p3259_p3 = pnand %p3258_p2, %p3252_p13 }
 0x2fd   : > { %v1420_v49 = vld [vmem:[#allocation2 + $0x30] sm:$0xff] }
 0x2fe   : > { %v1421_v48 = vld [vmem:[#allocation2 + $0x38] sm:$0xff] }
 0x2ff   : > { %1532 = vmatprep.subr.bf16.mxu1 %v1421_v48 }
 0x300   : > { %1533 = vmatpush1.bf16.msra.mxu1 %v1420_v49 }
 0x304   : > { %v1355_v51 = vpop.f32.mrb[36].mxu0 }
 0x305   : > { %v1362_v52 = vpack.c.bf16 %v1355_v51, %v1355_v51  ;;  %v1357_v53 = vpop.f32.mrb[37].mxu0 }
 0x306   : > { %v1363_v54 = vpack.c.bf16 %v1357_v53, %v1357_v53  ;;  %v1359_v55 = vpop.f32.mrb[38].mxu0 }
 0x307   : > { %1364 = vst [vmem:[#allocation2 + $0x40] sm:$0xf] %v1362_v52  ;;  %v1360_v56 = vpop.f32.mrb[39].mxu0 }
 0x308   : > { %1365 = vst [vmem:[#allocation2 + $0x48] sm:$0xf] %v1363_v54 }
 0x30e   : > { %v1422_v59 = vld [vmem:[#allocation2 + $0x40] sm:$0xff] }
 0x30f   : > { %v1423_v58 = vld [vmem:[#allocation2 + $0x48] sm:$0xff] }
 0x310   : > { %1534 = vmatprep.subr.bf16.mxu1 %v1423_v58 }
 0x311   : > { %1535 = vmatpush1.bf16.msra.mxu1 %v1422_v59 }
 0x312   : > { %1536 = vmatprep.subr.bf16.mxu1 %v3313_v13 }
 0x315   : > { %1537 = vmatpush1.bf16.msra.mxu1 %v3313_v13 }
 0x316   : > { %1538 = vmatprep.subr.bf16.mxu1 %v3313_v13 }
 0x319   : > { %1539 = vmatpush1.bf16.msra.mxu1 %v3313_v13 }
 0x31a   : > { %1540 = vmatprep.subr.bf16.mxu1 %v3313_v13 }
 0x31d   : > { %1541 = vmatpush1.bf16.msra.mxu1 %v3313_v13 }
 0x31e   : > { %2935 = vmatprep.subr.bf16.mxu1 %v3777_v31  ;;  %v3219_v31 = vld [vmem:[%s4316_s2 + $0x10] sm:$0xff]  }
 0x320   : > { %1559 = vmatmul.mubr.bf16.vlgmr.msra.gmra.mrb[32].mxu1 %v3217_v60 }
 0x321   : > { %2943 = vmatpush1.bf16.msra.mxu1 %v3782_v32  ;;  %1568 = vmatprep.mubr.bf16.mxu1 %v3313_v13  ;;  %v3220_v32 = vld [vmem:[%s4316_s2 + $0x18] sm:$0xff]  }
 0x322   : > { %2936 = vmatprep.subr.bf16.mxu1 %v3789_v33  ;;  %v3221_v33 = vld [vmem:[%s4316_s2 + $0x20] sm:$0xff]  }
 0x325   : > { %2944 = vmatpush1.bf16.msra.mxu1 %v3794_v34  ;;  %v3222_v34 = vld [vmem:[%s4316_s2 + $0x28] sm:$0xff]  }
 0x326   : > { %2937 = vmatprep.subr.bf16.mxu1 %v3801_v35  ;;  %v3223_v35 = vld [vmem:[%s4316_s2 + $0x30] sm:$0xff]  }
 0x328   : > { %1569 = vmatmul.mubr.bf16.gmra.mrb[36].mxu1 %v3218_v61 }
 0x329   : > { %1578 = vmatprep.mubr.bf16.mxu1 %v3313_v13  ;;  %2945 = vmatpush1.bf16.msra.mxu1 %v3806_v36  ;;  %v3224_v36 = vld [vmem:[%s4316_s2 + $0x38] sm:$0xff]  }
 0x32a   : > { %2938 = vmatprep.subr.bf16.mxu1 %v3812_v37  ;;  %v3225_v37 = vld [vmem:[%s4316_s2 + $0x40] sm:$0xff]  }
 0x32d   : > { %2946 = vmatpush1.bf16.msra.mxu1 %v3818_v38  ;;  %v3226_v38 = vld [vmem:[%s4316_s2 + $0x48] sm:$0xff]  }
 0x32e   : > { %2939 = vmatprep.subr.bf16.mxu1 %v3825_v39  ;;  %v3227_v39 = vld [vmem:[%s4316_s2 + $0x50] sm:$0xff]  }
 0x330   : > { %1579 = vmatmul.mubr.bf16.gmra.mrb[40].mxu1 %v3219_v31 }
 0x331   : > { %1588 = vmatprep.mubr.bf16.mxu1 %v3313_v13  ;;  %2947 = vmatpush1.bf16.msra.mxu1 %v3830_v40  ;;  %v3963_v40 = vpop.f32.mrb[40].mxu0 }
 0x332   : > { %2940 = vmatprep.subr.bf16.mxu1 %v3842_v42  ;;  %v3968_v42 = vpop.f32.mrb[41].mxu0 }
 0x335   : > { %2948 = vmatpush1.bf16.msra.mxu1 %v3837_v41  ;;  %v3228_v41 = vld [vmem:[%s4316_s2 + $0x58] sm:$0xff]  }
 0x336   : > { %2941 = vmatprep.subr.bf16.mxu1 %v3854_v44 }
 0x338   : > { %1589 = vmatmul.mubr.bf16.gmra.mrb[44].mxu1 %v3220_v32 }
 0x339   : > { %1598 = vmatprep.mubr.bf16.mxu1 %v3313_v13  ;;  %2949 = vmatpush1.bf16.msra.mxu1 %v3849_v43  ;;  %v3970_v43 = vpop.f32.mrb[42].mxu0 }
 0x33a   : > { %2942 = vmatprep.subr.bf16.mxu1 %v3866_v46  ;;  %v3972_v44 = vpop.f32.mrb[43].mxu0  ;;  %v3229_v46 = vld [vmem:[%s4316_s2 + $0x60] sm:$0xff]  }
 0x33d   : > { %2950 = vmatpush1.bf16.msra.mxu1 %v3861_v45  ;;  %v3975_v45 = vpop.f32.mrb[44].mxu0 }
 0x33e   : > { %v3980_v62 = vpop.f32.mrb[45].mxu0 }
 0x33f   : > { %v3982_v63 = vpop.f32.mrb[46].mxu0 }
 0x340   : > { %1599 = vmatmul.mubr.bf16.gmra.mrb[48].mxu1 %v3221_v33  ;;  %v3984_v0 = vpop.f32.mrb[47].mxu0 }
 0x341   : > { %1608 = vmatprep.mubr.bf16.mxu1 %v3313_v13  ;;  %v3987_v1 = vpop.f32.mrb[48].mxu0 }
 0x342   : > { %v3992_v3 = vpop.f32.mrb[49].mxu0 }
 0x343   : > { %v3994_v4 = vpop.f32.mrb[50].mxu0 }
 0x344   : > { %v3996_v5 = vpop.f32.mrb[51].mxu0 }
 0x345   : > { %v3999_v6 = vpop.f32.mrb[52].mxu0 }
 0x346   : > { %v4004_v8 = vpop.f32.mrb[53].mxu0 }
 0x347   : > { %v4006_v9 = vpop.f32.mrb[54].mxu0 }
 0x348   : > { %1609 = vmatmul.mubr.bf16.gmra.mrb[52].mxu1 %v3222_v34  ;;  %v4008_v10 = vpop.f32.mrb[55].mxu0 }
 0x349   : > { %1618 = vmatprep.mubr.bf16.mxu1 %v3313_v13  ;;  %v4011_v11 = vpop.f32.mrb[56].mxu0 }
 0x34a   : > { %v4016_v14 = vpop.f32.mrb[57].mxu0 }
 0x34b   : > { %v4018_v15 = vpop.f32.mrb[58].mxu0 }
 0x34c   : > { %v4020_v16 = vpop.f32.mrb[59].mxu0 }
 0x34d   : > { %v4023_v17 = vpop.f32.mrb[60].mxu0 }
 0x34e   : > { %v4025_v18 = vpop.f32.mrb[61].mxu0 }
 0x34f   : > { %v4027_v20 = vpop.f32.mrb[62].mxu0 }
 0x350   : > { %1619 = vmatmul.mubr.bf16.gmra.mrb[56].mxu1 %v3223_v35  ;;  %v4029_v21 = vpop.f32.mrb[63].mxu0 }
 0x351   : > { %1628 = vmatprep.mubr.bf16.mxu1 %v3313_v13 }
 0x354   : > { %v4033_v22 = vpop.f32.mrb[64].mxu0 }
 0x355   : > { %v4035_v23 = vpop.f32.mrb[65].mxu0 }
 0x356   : > { %v4037_v24 = vpop.f32.mrb[66].mxu0 }
 0x357   : > { %v4039_v25 = vpop.f32.mrb[67].mxu0 }
 0x358   : > { %1629 = vmatmul.mubr.bf16.gmra.mrb[60].mxu1 %v3224_v36 }
 0x359   : > { %1638 = vmatprep.mubr.bf16.mxu1 %v3313_v13 }
 0x35c   : > { %v4042_v27 = vpop.f32.mrb[68].mxu0 }
 0x35d   : > { %v4044_v28 = vpop.f32.mrb[69].mxu0 }
 0x35e   : > { %v4046_v29 = vpop.f32.mrb[70].mxu0 }
 0x35f   : > { %v4048_v30 = vpop.f32.mrb[71].mxu0 }
 0x360   : > { %1639 = vmatmul.mubr.bf16.gmra.mrb[64].mxu1 %v3225_v37 }
 0x361   : > { %1648 = vmatprep.mubr.bf16.mxu1 %v3313_v13 }
 0x364   : > { %v4050_v47 = vpop.f32.mrb[72].mxu0 }
 0x368   : > { %1649 = vmatmul.mubr.bf16.gmra.mrb[68].mxu1 %v3226_v38 }
 0x369   : > { %1658 = vmatprep.mubr.bf16.mxu1 %v3313_v13 }
 0x370   : > { %1659 = vmatmul.mubr.bf16.gmra.mrb[72].mxu1 %v3227_v39  ;;  %v2090_v39 = vlaneseq }
 0x371   : > { %1668 = vmatprep.mubr.bf16.mxu1 %v3313_v13 }
 0x378   : > { %1669 = vmatmul.mubr.bf16.gmra.mrb[76].mxu1 %v3228_v41  ;;  %v2091_v41 = vshrl.u32 %v2090_v39, 7 }
 0x379   : > { %1678 = vmatprep.mubr.bf16.mxu1 %v3313_v13 }
 0x380   : > { %1679 = vmatmul.mubr.bf16.gmra.mrb[80].mxu1 %v3229_v46  ;;  %v2092_v46 = vsub.s32 0, %v2091_v41 }
 0x381   : > { %1688 = vmatprep.mubr.bf16.mxu1 %v3313_v13 }
 0x388   : > { %1689 = vmatmul.mubr.bf16.gmra.mrb[84].mxu1 %v3230_v2  ;;  %v2088_v2 = vld [vmem:[%s4321_s7] sm:$0x3] }
 0x389   : > { %1698 = vmatprep.mubr.bf16.mxu1 %v3313_v13 }
 0x390   : > { %1699 = vmatmul.mubr.bf16.gmra.mrb[88].mxu1 %v3231_v7  ;;  %v2096_v7 = vsub.s32 1, %v2091_v41 }
 0x391   : > { %1708 = vmatprep.mubr.bf16.mxu1 %v3313_v13 }
 0x398   : > { %1709 = vmatmul.mubr.bf16.gmra.mrb[92].mxu1 %v3232_v12  ;;  %v4101_v12 = vrot.slane %v2088_v2, %v2092_v46 }
 0x399   : > { %2067 = vmatprep.mubr.bf16.mxu1 %v3313_v13 }
 0x3a0   : > { %2068 = vmatmul.mubr.bf16.vlgmr.msra.gmra.mrb[88].mxu1 %v3247_v19 }
 0x3a1   : > { %2077 = vmatprep.mubr.bf16.mxu1 %v3313_v13  ;;  %v4052_v13 = vpop.f32.mrb[73].mxu0 }
 0x3a2   : > { %v4054_v48 = vpop.f32.mrb[74].mxu0 }
 0x3a3   : > { %v4056_v49 = vpop.f32.mrb[75].mxu0 }
 0x3a4   : > { %v4058_v50 = vpop.f32.mrb[76].mxu0 }
 0x3a5   : > { %v4060_v51 = vpop.f32.mrb[77].mxu0 }
 0x3a6   : > { %v4062_v52 = vpop.f32.mrb[78].mxu0 }
 0x3a7   : > { %v4064_v53 = vpop.f32.mrb[79].mxu0 }
 0x3a8   : > { %2078 = vmatmul.mubr.bf16.gmra.mrb[92].mxu1 %v3248_v26  ;;  %v4066_v54 = vpop.f32.mrb[80].mxu0  ;;  %v4103_v26 = vrot.slane %v2088_v2, %v2096_v7 }
 0x3a9   : > { %v4068_v55 = vpop.f32.mrb[81].mxu0 }
 0x3aa   : > { %v4070_v56 = vpop.f32.mrb[82].mxu0 }
 0x3ab   : > { %v4072_v57 = vpop.f32.mrb[83].mxu0 }
 0x3ac   : > { %v4074_v58 = vpop.f32.mrb[84].mxu0 }
 0x3ad   : > { %v4076_v59 = vpop.f32.mrb[85].mxu0 }
 0x3ae   : > { %v4078_v60 = vpop.f32.mrb[86].mxu0 }
 0x3af   : > { %v4080_v61 = vpop.f32.mrb[87].mxu0 }
 0x3b0   : > { %v4082_v31 = vpop.f32.mrb[88].mxu0 }
 0x3b1   : > { %4325 = vst [vmem:[#allocation6_spill] sm:$0xff] %v4082_v31  ;;  %v4084_v32 = vpop.f32.mrb[89].mxu0 }
 0x3b2   : > { %4326 = vst [vmem:[#allocation7_spill] sm:$0xff] %v4084_v32  ;;  %v4086_v33 = vpop.f32.mrb[90].mxu0 }
 0x3b3   : > { %4327 = vst [vmem:[#allocation8_spill] sm:$0xff] %v4086_v33  ;;  %v4088_v34 = vpop.f32.mrb[91].mxu0 }
 0x3b4   : > { %4328 = vst [vmem:[#allocation9_spill] sm:$0xff] %v4088_v34  ;;  %v4090_v35 = vpop.f32.mrb[92].mxu0 }
 0x3b5   : > { %4329 = vst [vmem:[#allocation10_spill] sm:$0xff] %v4090_v35  ;;  %v4092_v36 = vpop.f32.mrb[93].mxu0 }
 0x3b6   : > { %4330 = vst [vmem:[#allocation11_spill] sm:$0xff] %v4092_v36  ;;  %v4094_v37 = vpop.f32.mrb[94].mxu0 }
 0x3b7   : > { %4331 = vst [vmem:[#allocation12_spill] sm:$0xff] %v4094_v37  ;;  %v4096_v38 = vpop.f32.mrb[95].mxu0 }
 0x3b8   : > { %4332 = vst [vmem:[#allocation13_spill] sm:$0xff] %v4096_v38 }
 0x3f3   : > { %v1560_v19 = vpop.f32.mrb[32].mxu1 }
 0x3f4   : > { %v1930_v36 = vadd.f32 %v3963_v40, %v1560_v19  ;;  %v1562_v35 = vpop.f32.mrb[33].mxu1 }
 0x3f5   : > { %v1932_v38 = vadd.f32 %v3968_v42, %v1562_v35  ;;  %v1564_v37 = vpop.f32.mrb[34].mxu1 }
 0x3f6   : > { %v2100_v39 = vadd.f32 %v4101_v12, %v1930_v36  ;;  %v1934_v34 = vadd.f32 %v3970_v43, %v1564_v37  ;;  %v1566_v33 = vpop.f32.mrb[35].mxu1 }
 0x3f7   : > { %v2101_v41 = vadd.f32 %v4103_v26, %v1932_v38  ;;  %v1936_v46 = vadd.f32 %v3972_v44, %v1566_v33 }
 0x3f8   : > { %v2164_v2 = vmax.f32 %v2100_v39, 0.0  ;;  %v2102_v7 = vadd.f32 %v4101_v12, %v1934_v34 }
 0x3f9   : > { %v2165_v40 = vmax.f32 %v2101_v41, 0.0  ;;  %v2103_v19 = vadd.f32 %v4103_v26, %v1936_v46 }
 0x3fa   : > { %v2166_v32 = vmax.f32 %v2102_v7, 0.0 }
 0x3fb   : > { %v2742_v42 = vpack.c.bf16 %v2165_v40, %v2164_v2  ;;  %v2167_v35 = vmax.f32 %v2103_v19, 0.0  ;;  %v1570_v31 = vpop.f32.mrb[36].mxu1 }
 0x3fc   : > { %v1940_v36 = vadd.f32 %v3975_v45, %v1570_v31  ;;  %v1572_v43 = vpop.f32.mrb[37].mxu1 }
 0x3fd   : > { %2420 = vst [vmem:[%s4117_s22] sm:$0xff] %v2742_v42  ;;  %v2743_v37 = vpack.c.bf16 %v2167_v35, %v2166_v32  ;;  %v1942_v44 = vadd.f32 %v3980_v62, %v1572_v43  ;;  %v1574_v33 = vpop.f32.mrb[38].mxu1 }
 0x3fe   : > { %v2104_v34 = vadd.f32 %v4101_v12, %v1940_v36  ;;  %v1944_v38 = vadd.f32 %v3982_v63, %v1574_v33  ;;  %v1576_v39 = vpop.f32.mrb[39].mxu1 }
 0x3ff   : > { %2421 = vst [vmem:[%s4117_s22 + $0x8] sm:$0xff] %v2743_v37  ;;  %v2105_v41 = vadd.f32 %v4103_v26, %v1942_v44  ;;  %v1946_v45 = vadd.f32 %v3984_v0, %v1576_v39 }
 0x400   : > { %v2168_v31 = vmax.f32 %v2104_v34, 0.0  ;;  %v2106_v46 = vadd.f32 %v4101_v12, %v1944_v38 }
 0x401   : > { %v2169_v2 = vmax.f32 %v2105_v41, 0.0  ;;  %v2107_v32 = vadd.f32 %v4103_v26, %v1946_v45 }
 0x402   : > { %v2170_v62 = vmax.f32 %v2106_v46, 0.0 }
 0x403   : > { %v2744_v7 = vpack.c.bf16 %v2169_v2, %v2168_v31  ;;  %v2171_v40 = vmax.f32 %v2107_v32, 0.0  ;;  %v1580_v19 = vpop.f32.mrb[40].mxu1 }
 0x404   : > { %v1950_v42 = vadd.f32 %v3987_v1, %v1580_v19  ;;  %v1582_v63 = vpop.f32.mrb[41].mxu1 }
 0x405   : > { %2422 = vst [vmem:[%s4117_s22 + $0x10] sm:$0xff] %v2744_v7  ;;  %v2745_v35 = vpack.c.bf16 %v2171_v40, %v2170_v62  ;;  %v1952_v36 = vadd.f32 %v3992_v3, %v1582_v63  ;;  %v1584_v43 = vpop.f32.mrb[42].mxu1 }
 0x406   : > { %v2108_v0 = vadd.f32 %v4101_v12, %v1950_v42  ;;  %v1954_v37 = vadd.f32 %v3994_v4, %v1584_v43  ;;  %v1586_v44 = vpop.f32.mrb[43].mxu1 }
 0x407   : > { %2423 = vst [vmem:[%s4117_s22 + $0x18] sm:$0xff] %v2745_v35  ;;  %v2109_v33 = vadd.f32 %v4103_v26, %v1952_v36  ;;  %v1956_v34 = vadd.f32 %v3996_v5, %v1586_v44 }
 0x408   : > { %v2172_v38 = vmax.f32 %v2108_v0, 0.0  ;;  %v2110_v1 = vadd.f32 %v4101_v12, %v1954_v37 }
 0x409   : > { %v2173_v39 = vmax.f32 %v2109_v33, 0.0  ;;  %v2111_v41 = vadd.f32 %v4103_v26, %v1956_v34 }
 0x40a   : > { %v2174_v3 = vmax.f32 %v2110_v1, 0.0 }
 0x40b   : > { %v2746_v45 = vpack.c.bf16 %v2173_v39, %v2172_v38  ;;  %v2175_v31 = vmax.f32 %v2111_v41, 0.0  ;;  %v1590_v46 = vpop.f32.mrb[44].mxu1 }
 0x40c   : > { %v1960_v2 = vadd.f32 %v3999_v6, %v1590_v46  ;;  %v1592_v4 = vpop.f32.mrb[45].mxu1 }
 0x40d   : > { %2424 = vst [vmem:[%s4117_s22 + $0x20] sm:$0xff] %v2746_v45  ;;  %v2747_v32 = vpack.c.bf16 %v2175_v31, %v2174_v3  ;;  %v1962_v62 = vadd.f32 %v4004_v8, %v1592_v4  ;;  %v1594_v7 = vpop.f32.mrb[46].mxu1 }
 0x40e   : > { %v2112_v5 = vadd.f32 %v4101_v12, %v1960_v2  ;;  %v1964_v40 = vadd.f32 %v4006_v9, %v1594_v7  ;;  %v1596_v19 = vpop.f32.mrb[47].mxu1 }
 0x40f   : > { %2425 = vst [vmem:[%s4117_s22 + $0x28] sm:$0xff] %v2747_v32  ;;  %v2113_v42 = vadd.f32 %v4103_v26, %v1962_v62  ;;  %v1966_v63 = vadd.f32 %v4008_v10, %v1596_v19 }
 0x410   : > { %v2176_v35 = vmax.f32 %v2112_v5, 0.0  ;;  %v2114_v6 = vadd.f32 %v4101_v12, %v1964_v40 }
 0x411   : > { %v2177_v36 = vmax.f32 %v2113_v42, 0.0  ;;  %v2115_v43 = vadd.f32 %v4103_v26, %v1966_v63 }
 0x412   : > { %v2178_v8 = vmax.f32 %v2114_v6, 0.0 }
 0x413   : > { %v2748_v0 = vpack.c.bf16 %v2177_v36, %v2176_v35  ;;  %v2179_v37 = vmax.f32 %v2115_v43, 0.0  ;;  %v1600_v44 = vpop.f32.mrb[48].mxu1 }
 0x414   : > { %v1970_v33 = vadd.f32 %v4011_v11, %v1600_v44  ;;  %v1602_v9 = vpop.f32.mrb[49].mxu1 }
 0x415   : > { %2426 = vst [vmem:[%s4117_s22 + $0x30] sm:$0xff] %v2748_v0  ;;  %v2749_v34 = vpack.c.bf16 %v2179_v37, %v2178_v8  ;;  %v1972_v38 = vadd.f32 %v4016_v14, %v1602_v9  ;;  %v1604_v1 = vpop.f32.mrb[50].mxu1 }
 0x416   : > { %v2116_v10 = vadd.f32 %v4101_v12, %v1970_v33  ;;  %v1974_v39 = vadd.f32 %v4018_v15, %v1604_v1  ;;  %v1606_v41 = vpop.f32.mrb[51].mxu1 }
 0x417   : > { %2427 = vst [vmem:[%s4117_s22 + $0x38] sm:$0xff] %v2749_v34  ;;  %v2117_v3 = vadd.f32 %v4103_v26, %v1972_v38  ;;  %v1976_v45 = vadd.f32 %v4020_v16, %v1606_v41 }
 0x418   : > { %v2180_v31 = vmax.f32 %v2116_v10, 0.0  ;;  %v2118_v11 = vadd.f32 %v4101_v12, %v1974_v39 }
 0x419   : > { %v2181_v46 = vmax.f32 %v2117_v3, 0.0  ;;  %v2119_v2 = vadd.f32 %v4103_v26, %v1976_v45 }
 0x41a   : > { %v2182_v14 = vmax.f32 %v2118_v11, 0.0 }
 0x41b   : > { %v2750_v4 = vpack.c.bf16 %v2181_v46, %v2180_v31  ;;  %v2183_v32 = vmax.f32 %v2119_v2, 0.0  ;;  %v1610_v62 = vpop.f32.mrb[52].mxu1 }
 0x41c   : > { %v1980_v7 = vadd.f32 %v4023_v17, %v1610_v62  ;;  %v1612_v15 = vpop.f32.mrb[53].mxu1 }
 0x41d   : > { %2428 = vst [vmem:[%s4117_s22 + $0x40] sm:$0xff] %v2750_v4  ;;  %v2751_v5 = vpack.c.bf16 %v2183_v32, %v2182_v14  ;;  %v1982_v40 = vadd.f32 %v4025_v18, %v1612_v15  ;;  %v1614_v19 = vpop.f32.mrb[54].mxu1 }
 0x41e   : > { %v2120_v16 = vadd.f32 %v4101_v12, %v1980_v7  ;;  %v1984_v42 = vadd.f32 %v4027_v20, %v1614_v19  ;;  %v1616_v63 = vpop.f32.mrb[55].mxu1 }
 0x41f   : > { %2429 = vst [vmem:[%s4117_s22 + $0x48] sm:$0xff] %v2751_v5  ;;  %v2121_v35 = vadd.f32 %v4103_v26, %v1982_v40  ;;  %v1986_v6 = vadd.f32 %v4029_v21, %v1616_v63 }
 0x420   : > { %v2184_v36 = vmax.f32 %v2120_v16, 0.0  ;;  %v2122_v17 = vadd.f32 %v4101_v12, %v1984_v42 }
 0x421   : > { %v2185_v43 = vmax.f32 %v2121_v35, 0.0  ;;  %v2123_v8 = vadd.f32 %v4103_v26, %v1986_v6 }
 0x422   : > { %v2186_v18 = vmax.f32 %v2122_v17, 0.0 }
 0x423   : > { %v2752_v0 = vpack.c.bf16 %v2185_v43, %v2184_v36  ;;  %v2187_v37 = vmax.f32 %v2123_v8, 0.0  ;;  %v1620_v44 = vpop.f32.mrb[56].mxu1 }
 0x424   : > { %v1990_v33 = vadd.f32 %v4033_v22, %v1620_v44  ;;  %v1622_v20 = vpop.f32.mrb[57].mxu1 }
 0x425   : > { %2430 = vst [vmem:[%s4117_s22 + $0x50] sm:$0xff] %v2752_v0  ;;  %v2753_v9 = vpack.c.bf16 %v2187_v37, %v2186_v18  ;;  %v1992_v34 = vadd.f32 %v4035_v23, %v1622_v20  ;;  %v1624_v38 = vpop.f32.mrb[58].mxu1 }
 0x426   : > { %v2124_v21 = vadd.f32 %v4101_v12, %v1990_v33  ;;  %v1994_v1 = vadd.f32 %v4037_v24, %v1624_v38  ;;  %v1626_v10 = vpop.f32.mrb[59].mxu1 }
 0x427   : > { %2431 = vst [vmem:[%s4117_s22 + $0x58] sm:$0xff] %v2753_v9  ;;  %v2125_v39 = vadd.f32 %v4103_v26, %v1992_v34  ;;  %v1996_v41 = vadd.f32 %v4039_v25, %v1626_v10 }
 0x428   : > { %v2188_v3 = vmax.f32 %v2124_v21, 0.0  ;;  %v2126_v22 = vadd.f32 %v4101_v12, %v1994_v1 }
 0x429   : > { %v2189_v45 = vmax.f32 %v2125_v39, 0.0  ;;  %v2127_v31 = vadd.f32 %v4103_v26, %v1996_v41 }
 0x42a   : > { %v2190_v23 = vmax.f32 %v2126_v22, 0.0 }
 0x42b   : > { %v2754_v11 = vpack.c.bf16 %v2189_v45, %v2188_v3  ;;  %v2191_v46 = vmax.f32 %v2127_v31, 0.0  ;;  %v1630_v2 = vpop.f32.mrb[60].mxu1 }
 0x42c   : > { %v2000_v14 = vadd.f32 %v4042_v27, %v1630_v2  ;;  %v1632_v24 = vpop.f32.mrb[61].mxu1 }
 0x42d   : > { %2432 = vst [vmem:[%s4117_s22 + $0x60] sm:$0xff] %v2754_v11  ;;  %v2755_v4 = vpack.c.bf16 %v2191_v46, %v2190_v23  ;;  %v2002_v32 = vadd.f32 %v4044_v28, %v1632_v24  ;;  %v1634_v62 = vpop.f32.mrb[62].mxu1 }
 0x42e   : > { %v2128_v25 = vadd.f32 %v4101_v12, %v2000_v14  ;;  %v2004_v7 = vadd.f32 %v4046_v29, %v1634_v62  ;;  %v1636_v15 = vpop.f32.mrb[63].mxu1 }
 0x42f   : > { %2433 = vst [vmem:[%s4117_s22 + $0x68] sm:$0xff] %v2755_v4  ;;  %v2129_v5 = vadd.f32 %v4103_v26, %v2002_v32  ;;  %v2006_v40 = vadd.f32 %v4048_v30, %v1636_v15 }
 0x430   : > { %v2192_v19 = vmax.f32 %v2128_v25, 0.0  ;;  %v2130_v27 = vadd.f32 %v4101_v12, %v2004_v7 }
 0x431   : > { %v2193_v16 = vmax.f32 %v2129_v5, 0.0  ;;  %v2131_v42 = vadd.f32 %v4103_v26, %v2006_v40 }
 0x432   : > { %v2194_v28 = vmax.f32 %v2130_v27, 0.0 }
 0x433   : > { %v2756_v63 = vpack.c.bf16 %v2193_v16, %v2192_v19  ;;  %v2195_v35 = vmax.f32 %v2131_v42, 0.0  ;;  %v1640_v6 = vpop.f32.mrb[64].mxu1 }
 0x434   : > { %v2010_v36 = vadd.f32 %v4050_v47, %v1640_v6  ;;  %v1642_v29 = vpop.f32.mrb[65].mxu1 }
 0x435   : > { %2434 = vst [vmem:[%s4117_s22 + $0x70] sm:$0xff] %v2756_v63  ;;  %v2757_v17 = vpack.c.bf16 %v2195_v35, %v2194_v28  ;;  %v2012_v43 = vadd.f32 %v4052_v13, %v1642_v29  ;;  %v1644_v8 = vpop.f32.mrb[66].mxu1 }
 0x436   : > { %v2132_v30 = vadd.f32 %v4101_v12, %v2010_v36  ;;  %v2014_v18 = vadd.f32 %v4054_v48, %v1644_v8  ;;  %v1646_v0 = vpop.f32.mrb[67].mxu1 }
 0x437   : > { %2435 = vst [vmem:[%s4117_s22 + $0x78] sm:$0xff] %v2757_v17  ;;  %v2133_v37 = vadd.f32 %v4103_v26, %v2012_v43  ;;  %v2016_v44 = vadd.f32 %v4056_v49, %v1646_v0 }
 0x438   : > { %v2196_v33 = vmax.f32 %v2132_v30, 0.0  ;;  %v2134_v47 = vadd.f32 %v4101_v12, %v2014_v18 }
 0x439   : > { %v2197_v20 = vmax.f32 %v2133_v37, 0.0  ;;  %v2135_v9 = vadd.f32 %v4103_v26, %v2016_v44 }
 0x43a   : > { %v2198_v13 = vmax.f32 %v2134_v47, 0.0 }
 0x43b   : > { %v2758_v34 = vpack.c.bf16 %v2197_v20, %v2196_v33  ;;  %v2199_v38 = vmax.f32 %v2135_v9, 0.0  ;;  %v1650_v21 = vpop.f32.mrb[68].mxu1  ;;  %v4333_v20 = vld [vmem:[#allocation6_spill] sm:$0xff] }
 0x43c   : > { %v2020_v1 = vadd.f32 %v4058_v50, %v1650_v21  ;;  %v1652_v48 = vpop.f32.mrb[69].mxu1 }
 0x43d   : > { %2436 = vst [vmem:[%s4117_s22 + $0x80] sm:$0xff] %v2758_v34  ;;  %v2759_v10 = vpack.c.bf16 %v2199_v38, %v2198_v13  ;;  %v2022_v39 = vadd.f32 %v4060_v51, %v1652_v48  ;;  %v1654_v41 = vpop.f32.mrb[70].mxu1  ;;  %v4334_v34 = vld [vmem:[#allocation7_spill] sm:$0xff] }
 0x43e   : > { %v2136_v49 = vadd.f32 %v4101_v12, %v2020_v1  ;;  %v2024_v3 = vadd.f32 %v4062_v52, %v1654_v41  ;;  %v1656_v22 = vpop.f32.mrb[71].mxu1  ;;  %v4335_v1 = vld [vmem:[#allocation8_spill] sm:$0xff]  ;;  %v4336_v41 = vld [vmem:[#allocation9_spill] sm:$0xff] }
 0x43f   : > { %2437 = vst [vmem:[%s4117_s22 + $0x88] sm:$0xff] %v2759_v10  ;;  %v2137_v45 = vadd.f32 %v4103_v26, %v2022_v39  ;;  %v2026_v31 = vadd.f32 %v4064_v53, %v1656_v22 }
 0x440   : > { %v2200_v23 = vmax.f32 %v2136_v49, 0.0  ;;  %v2138_v50 = vadd.f32 %v4101_v12, %v2024_v3 }
 0x441   : > { %v2201_v11 = vmax.f32 %v2137_v45, 0.0  ;;  %v2139_v46 = vadd.f32 %v4103_v26, %v2026_v31 }
 0x442   : > { %v2202_v51 = vmax.f32 %v2138_v50, 0.0 }
 0x443   : > { %v2760_v2 = vpack.c.bf16 %v2201_v11, %v2200_v23  ;;  %v2203_v14 = vmax.f32 %v2139_v46, 0.0  ;;  %v1660_v24 = vpop.f32.mrb[72].mxu1 }
 0x444   : > { %v2030_v4 = vadd.f32 %v4066_v54, %v1660_v24  ;;  %v1662_v52 = vpop.f32.mrb[73].mxu1 }
 0x445   : > { %2438 = vst [vmem:[%s4117_s22 + $0x90] sm:$0xff] %v2760_v2  ;;  %v2761_v32 = vpack.c.bf16 %v2203_v14, %v2202_v51  ;;  %v2032_v62 = vadd.f32 %v4068_v55, %v1662_v52  ;;  %v1664_v25 = vpop.f32.mrb[74].mxu1  ;;  %v4337_v51 = vld [vmem:[#allocation10_spill] sm:$0xff] }
 0x446   : > { %v2140_v53 = vadd.f32 %v4101_v12, %v2030_v4  ;;  %v2034_v7 = vadd.f32 %v4070_v56, %v1664_v25  ;;  %v1666_v15 = vpop.f32.mrb[75].mxu1  ;;  %v4338_v4 = vld [vmem:[#allocation11_spill] sm:$0xff]  ;;  %v4339_v25 = vld [vmem:[#allocation12_spill] sm:$0xff] }
 0x447   : > { %2439 = vst [vmem:[%s4117_s22 + $0x98] sm:$0xff] %v2761_v32  ;;  %v2141_v5 = vadd.f32 %v4103_v26, %v2032_v62  ;;  %v2036_v40 = vadd.f32 %v4072_v57, %v1666_v15 }
 0x448   : > { %v2204_v19 = vmax.f32 %v2140_v53, 0.0  ;;  %v2142_v54 = vadd.f32 %v4101_v12, %v2034_v7 }
 0x449   : > { %v2205_v27 = vmax.f32 %v2141_v5, 0.0  ;;  %v2143_v16 = vadd.f32 %v4103_v26, %v2036_v40  ;;  %v4340_v5 = vld [vmem:[#allocation13_spill] sm:$0xff] }
 0x44a   : > { %v2206_v55 = vmax.f32 %v2142_v54, 0.0 }
 0x44b   : > { %v2762_v42 = vpack.c.bf16 %v2205_v27, %v2204_v19  ;;  %v2207_v28 = vmax.f32 %v2143_v16, 0.0  ;;  %v1670_v63 = vpop.f32.mrb[76].mxu1 }
 0x44c   : > { %v2040_v35 = vadd.f32 %v4074_v58, %v1670_v63  ;;  %v1672_v56 = vpop.f32.mrb[77].mxu1 }
 0x44d   : > { %2440 = vst [vmem:[%s4117_s22 + $0xa0] sm:$0xff] %v2762_v42  ;;  %v2763_v6 = vpack.c.bf16 %v2207_v28, %v2206_v55  ;;  %v2042_v36 = vadd.f32 %v4076_v59, %v1672_v56  ;;  %v1674_v29 = vpop.f32.mrb[78].mxu1 }
 0x44e   : > { %v2144_v57 = vadd.f32 %v4101_v12, %v2040_v35  ;;  %v2044_v17 = vadd.f32 %v4078_v60, %v1674_v29  ;;  %v1676_v43 = vpop.f32.mrb[79].mxu1 }
 0x44f   : > { %2441 = vst [vmem:[%s4117_s22 + $0xa8] sm:$0xff] %v2763_v6  ;;  %v2145_v8 = vadd.f32 %v4103_v26, %v2042_v36  ;;  %v2046_v30 = vadd.f32 %v4080_v61, %v1676_v43 }
 0x450   : > { %v2208_v18 = vmax.f32 %v2144_v57, 0.0  ;;  %v2146_v58 = vadd.f32 %v4101_v12, %v2044_v17 }
 0x451   : > { %v2209_v0 = vmax.f32 %v2145_v8, 0.0  ;;  %v2147_v37 = vadd.f32 %v4103_v26, %v2046_v30 }
 0x452   : > { %v2210_v59 = vmax.f32 %v2146_v58, 0.0 }
 0x453   : > { %v2764_v44 = vpack.c.bf16 %v2209_v0, %v2208_v18  ;;  %v2211_v33 = vmax.f32 %v2147_v37, 0.0  ;;  %v1680_v47 = vpop.f32.mrb[80].mxu1 }
 0x454   : > { %v2050_v9 = vadd.f32 %v4333_v20, %v1680_v47  ;;  %v1682_v60 = vpop.f32.mrb[81].mxu1 }
 0x455   : > { %2442 = vst [vmem:[%s4117_s22 + $0xb0] sm:$0xff] %v2764_v44  ;;  %v2765_v13 = vpack.c.bf16 %v2211_v33, %v2210_v59  ;;  %v2052_v38 = vadd.f32 %v4334_v34, %v1682_v60  ;;  %v1684_v21 = vpop.f32.mrb[82].mxu1 }
 0x456   : > { %v2148_v61 = vadd.f32 %v4101_v12, %v2050_v9  ;;  %v2054_v48 = vadd.f32 %v4335_v1, %v1684_v21  ;;  %v1686_v10 = vpop.f32.mrb[83].mxu1 }
 0x457   : > { %2443 = vst [vmem:[%s4117_s22 + $0xb8] sm:$0xff] %v2765_v13  ;;  %v2149_v39 = vadd.f32 %v4103_v26, %v2052_v38  ;;  %v2056_v49 = vadd.f32 %v4336_v41, %v1686_v10 }
 0x458   : > { %v2212_v3 = vmax.f32 %v2148_v61, 0.0  ;;  %v2150_v22 = vadd.f32 %v4101_v12, %v2054_v48 }
 0x459   : > { %v2213_v45 = vmax.f32 %v2149_v39, 0.0  ;;  %v2151_v31 = vadd.f32 %v4103_v26, %v2056_v49 }
 0x45a   : > { %v2214_v23 = vmax.f32 %v2150_v22, 0.0 }
 0x45b   : > { %v2766_v50 = vpack.c.bf16 %v2213_v45, %v2212_v3  ;;  %v2215_v11 = vmax.f32 %v2151_v31, 0.0  ;;  %v1690_v46 = vpop.f32.mrb[84].mxu1 }
 0x45c   : > { %v2060_v2 = vadd.f32 %v4337_v51, %v1690_v46  ;;  %v1692_v14 = vpop.f32.mrb[85].mxu1 }
 0x45d   : > { %2444 = vst [vmem:[%s4117_s22 + $0xc0] sm:$0xff] %v2766_v50  ;;  %v2767_v24 = vpack.c.bf16 %v2215_v11, %v2214_v23  ;;  %v2062_v52 = vadd.f32 %v4338_v4, %v1692_v14  ;;  %v1694_v32 = vpop.f32.mrb[86].mxu1 }
 0x45e   : > { %v2152_v62 = vadd.f32 %v4101_v12, %v2060_v2  ;;  %v2064_v53 = vadd.f32 %v4339_v25, %v1694_v32  ;;  %v1696_v7 = vpop.f32.mrb[87].mxu1 }
 0x45f   : > { %2445 = vst [vmem:[%s4117_s22 + $0xc8] sm:$0xff] %v2767_v24  ;;  %v2153_v15 = vadd.f32 %v4103_v26, %v2062_v52  ;;  %v2066_v40 = vadd.f32 %v4340_v5, %v1696_v7 }
 0x460   : > { %v2216_v19 = vmax.f32 %v2152_v62, 0.0  ;;  %v2154_v54 = vadd.f32 %v4101_v12, %v2064_v53 }
 0x461   : > { %v2217_v27 = vmax.f32 %v2153_v15, 0.0  ;;  %v2155_v16 = vadd.f32 %v4103_v26, %v2066_v40 }
 0x462   : > { %v2218_v55 = vmax.f32 %v2154_v54, 0.0 }
 0x463   : > { %v2768_v42 = vpack.c.bf16 %v2217_v27, %v2216_v19  ;;  %v2219_v28 = vmax.f32 %v2155_v16, 0.0 }
 0x465   : > { %2446 = vst [vmem:[%s4117_s22 + $0xd0] sm:$0xff] %v2768_v42  ;;  %v2769_v63 = vpack.c.bf16 %v2219_v28, %v2218_v55 }
 0x467   : > { %2447 = vst [vmem:[%s4117_s22 + $0xd8] sm:$0xff] %v2769_v63 }
 0x473   : > { %v2069_v35 = vpop.f32.mrb[88].mxu1 }
 0x474   : > { %v2156_v56 = vadd.f32 %v4101_v12, %v2069_v35  ;;  %v2071_v6 = vpop.f32.mrb[89].mxu1 }
 0x475   : > { %v2157_v36 = vadd.f32 %v4103_v26, %v2071_v6  ;;  %v2073_v29 = vpop.f32.mrb[90].mxu1 }
 0x476   : > { %v2220_v57 = vmax.f32 %v2156_v56, 0.0  ;;  %v2158_v17 = vadd.f32 %v4101_v12, %v2073_v29  ;;  %v2075_v43 = vpop.f32.mrb[91].mxu1 }
 0x477   : > { %v2221_v8 = vmax.f32 %v2157_v36, 0.0  ;;  %v2159_v30 = vadd.f32 %v4103_v26, %v2075_v43 }
 0x478   : > { %v2222_v18 = vmax.f32 %v2158_v17, 0.0 }
 0x479   : > { %v2770_v58 = vpack.c.bf16 %v2221_v8, %v2220_v57  ;;  %v2223_v0 = vmax.f32 %v2159_v30, 0.0 }
 0x47b   : > { %2448 = vst [vmem:[%s4117_s22 + $0xe0] sm:$0xff] %v2770_v58  ;;  %v2771_v37 = vpack.c.bf16 %v2223_v0, %v2222_v18  ;;  %v2079_v59 = vpop.f32.mrb[92].mxu1 }
 0x47c   : > { %v2160_v44 = vadd.f32 %v4101_v12, %v2079_v59  ;;  %v2081_v33 = vpop.f32.mrb[93].mxu1 }
 0x47d   : > { %2449 = vst [vmem:[%s4117_s22 + $0xe8] sm:$0xff] %v2771_v37  ;;  %v2161_v47 = vadd.f32 %v4103_v26, %v2081_v33  ;;  %v2083_v20 = vpop.f32.mrb[94].mxu1 }
 0x47e   : > { %v2224_v9 = vmax.f32 %v2160_v44, 0.0  ;;  %v2162_v60 = vadd.f32 %v4101_v12, %v2083_v20  ;;  %v2085_v13 = vpop.f32.mrb[95].mxu1 }
 0x47f   : > { %v2225_v34 = vmax.f32 %v2161_v47, 0.0  ;;  %v2163_v38 = vadd.f32 %v4103_v26, %v2085_v13 }
 0x480   : > { %v2226_v21 = vmax.f32 %v2162_v60, 0.0 }
 0x481   : > { %v2772_v61 = vpack.c.bf16 %v2225_v34, %v2224_v9  ;;  %v2227_v1 = vmax.f32 %v2163_v38, 0.0 }
 0x483   : > { %2450 = vst [vmem:[%s4117_s22 + $0xf0] sm:$0xff] %v2772_v61  ;;  %v2773_v12 = vpack.c.bf16 %v2227_v1, %v2226_v21 }
 0x485   : > { %2451 = vst [vmem:[%s4117_s22 + $0xf8] sm:$0xff] %v2773_v12 }
 0x486   : > { %3262 = shalt.err (!%p3259_p3)
}
 0x487   : > { %s3263_s19 = scalar_lea.hbm %s4265_s12, 4096  ;;  %s3267_s22 = scalar_lea.hbm %s4322_s8, 8192 }
 0x488   : > { %p3264_p4 = scmp.ne.s32.totalorder %s4265_s12, %s3263_s19  ;;  %p3268_p9 = scmp.lt.u32.totalorder %s4265_s12, %s4322_s8 }
 0x489   : > { %p3269_p10 = scmp.lt.u32.totalorder %s3267_s22, %s3263_s19  ;;  %p3271_p12 = scmp.lt.u32.totalorder %s3263_s19, %s4265_s12 }
 0x48a   : > { %p3265_p7 = pnand %p3264_p4, %p3400_p5 }
 0x48b   : > { %p3270_p11 = por %p3269_p10, %p3268_p9 }
 0x48c   : > { %p3266_p8 = pneg %p3265_p7 }
 0x48d   : > { %p3272_p13 = por %p3271_p12, %p3270_p11 }
 0x48f   : > { %p3273_p0 = pnand %p3272_p13, %p3266_p8 }
 0x491   : > { %3276 = shalt.err (!%p3273_p0)
}
 0x492   : > { %s3315_s10 = smov 128   ;;  %s3316_s9 = smov 8  }
 0x493   : > { %3031 = dma.vmem_to_hbm [thread:$0]  (%p3400_p5), %s4267_s25, 4096, %s4265_s12, %s4273_s13, %s3315_s10, %s3315_s10, %s3316_s9  }
 0x494 PF: > { %p3037_p1 = scmp.ge.s32.totalorder %s3311_s30, 2  ;;  %s2481_s17 = sand.u32 1, %s3299_s27  }
 0x495   : > { %s2482_s18 = scalar_lea.sflag [#allocation4], %s2481_s17 }
 0x496   : > { %p3034_p2 = pnand %p3037_p1, %p3404_p6 }
 0x498   : > { %3294 = dma.done.wait (!%p3034_p2), %s2482_s18, 4096  }
 0x499   : > { %3296 = vsyncadd (!%p3034_p2), %s2482_s18, 4294963200  ;;  %p18_p3 = scmp.ge.s32.totalorder %s3387_s11, 4   ;;  %s4341_s27 = smov %s3303_s28 }
 0x49a   : > { %s4342_s28 = smov %s3307_s29  ;;  %s4343_s29 = smov %s3398_s14 }
 0x49b   : > { %s4344_s30 = smov %s3387_s11  ;;  %20 = sbr.rel (!%p18_p3) target bundleno = 3 (0x3), region = 90 }
 0x4a2   :  { %2487 = vsyncpa [#allocation4], 1 }
 0x4a3   :  { %2489 = vsyncpa [#allocation4 + $0x1], 1 }

</bundles_post_ra>
